<compile_context>
chip_gen: v5e
topology: v5e:2x2
jax: 0.10.0
libtpu: 0.0.40
codegen_flags: <defaults>
</compile_context>

<pallas_src>
import functools

import jax
import jax.numpy as jnp
from jax.experimental import pallas as pl
from jax.experimental.pallas import tpu as pltpu


def _pick_chunk(n, prefer=(512, 256, 128)):
    """Largest preferred chunk size that divides n (falls back to n itself)."""
    for c in prefer:
        if n >= c and n % c == 0:
            return c
    return n


def _layer_norm(x, gamma, beta, eps=1e-5):
    mu = jnp.mean(x, axis=-1, keepdims=True)
    var = jnp.mean(jnp.square(x - mu), axis=-1, keepdims=True)
    return (x - mu) * jax.lax.rsqrt(var + eps) * gamma + beta


def _attention_block(q_bf, kv_bf, res, bias_ref, npm,
                     wq_ref, wk_ref, wv_ref, wo_ref, bo_ref, g_ref, b_ref,
                     n_head, d_head, kc):
    """Post-LN multi-head attention for one batch element.

    q_bf    : (Lq, D)      bf16  query source
    kv_bf   : (Lk, D)      bf16  key/value source
    res     : (Lq, D)      f32   residual input
    bias_ref: (1, Lq, Lk)  bf16  ref, additive attention bias (0 or -1e9)
    npm     : (Lq, 1)      f32   non-pad mask
    """
    Lq = q_bf.shape[0]
    Lk = kv_bf.shape[0]
    scale = 1.0 / float(d_head) ** 0.5

    # Fused whole-width projections: single MXU matmuls over all heads.
    q = jnp.dot(q_bf, wq_ref[...], preferred_element_type=jnp.float32)
    q = (q * scale).astype(jnp.bfloat16)                          # (Lq, HD)
    k = jnp.dot(kv_bf, wk_ref[...],
                preferred_element_type=jnp.float32).astype(jnp.bfloat16)
    v = jnp.dot(kv_bf, wv_ref[...],
                preferred_element_type=jnp.float32).astype(jnp.bfloat16)

    n_chunks = Lk // kc
    ctx_heads = []
    for h in range(n_head):
        hs = slice(h * d_head, (h + 1) * d_head)
        qh, kh, vh = q[:, hs], k[:, hs], v[:, hs]
        # Flash-style online softmax over Lk chunks: bounds the live f32
        # score block to (Lq, kc) instead of (Lq, Lk).
        m = jnp.full((Lq, 1), -1e30, dtype=jnp.float32)
        l = jnp.zeros((Lq, 1), dtype=jnp.float32)
        acc = jnp.zeros((Lq, d_head), dtype=jnp.float32)
        for c in range(n_chunks):
            cs = slice(c * kc, (c + 1) * kc)
            s = jax.lax.dot_general(qh, kh[cs], (((1,), (1,)), ((), ())),
                                    preferred_element_type=jnp.float32)
            s = s + bias_ref[0, :, cs].astype(jnp.float32)
            m_new = jnp.maximum(m, jnp.max(s, axis=-1, keepdims=True))
            alpha = jnp.exp(m - m_new)
            p = jnp.exp(s - m_new)
            l = alpha * l + jnp.sum(p, axis=-1, keepdims=True)
            acc = alpha * acc + jnp.dot(p.astype(jnp.bfloat16), vh[cs],
                                        preferred_element_type=jnp.float32)
            m = m_new
        ctx_heads.append(
            (acc * pl.reciprocal(l, approx=True)).astype(jnp.bfloat16))

    # Lane-dense assembly of all heads, then ONE fused output projection.
    ctx = jnp.concatenate(ctx_heads, axis=-1)                     # (Lq, HD) bf16
    o = jnp.dot(ctx, wo_ref[...], preferred_element_type=jnp.float32)
    o = o + bo_ref[...] + res                                     # f32 residual
    return _layer_norm(o, g_ref[...], b_ref[...]) * npm


def decoder_layer_kernel(dec_ref, enc_ref, sbias_ref, ebias_ref, npm_ref,
                         s_wq, s_wk, s_wv, s_wo, s_bo, s_g, s_b,
                         e_wq, e_wk, e_wv, e_wo, e_bo, e_g, e_b,
                         f_w1, f_b1, f_w2, f_b2, f_g, f_b,
                         out_ref, *, n_head, d_head, kc_self, kc_enc, dc_ffn):
    x_bf = dec_ref[0]              # (Lq, D) bf16 -- kept bf16, upcast lazily
    enc_bf = enc_ref[0]            # (Lk, D) bf16
    npm = npm_ref[0]               # (Lq, 1) f32

    # --- masked self-attention + residual + LN + non-pad mask ---
    x = _attention_block(x_bf, x_bf, x_bf.astype(jnp.float32), sbias_ref, npm,
                         s_wq, s_wk, s_wv, s_wo, s_bo, s_g, s_b,
                         n_head, d_head, kc_self)
    # --- encoder-decoder attention + residual + LN + non-pad mask ---
    x = _attention_block(x.astype(jnp.bfloat16), enc_bf, x, ebias_ref, npm,
                         e_wq, e_wk, e_wv, e_wo, e_bo, e_g, e_b,
                         n_head, d_head, kc_enc)
    # --- position-wise FFN, chunked over d_inner, + residual + LN + mask ---
    xb = x.astype(jnp.bfloat16)
    Di = f_w1.shape[1]
    y = None
    for c in range(Di // dc_ffn):
        cs = slice(c * dc_ffn, (c + 1) * dc_ffn)
        h = jnp.dot(xb, f_w1[:, cs], preferred_element_type=jnp.float32)
        h = jnp.maximum(h + f_b1[:, cs], 0.0)
        part = jnp.dot(h.astype(jnp.bfloat16), f_w2[cs, :],
                       preferred_element_type=jnp.float32)
        y = part if y is None else y + part
    y = y + f_b2[...] + x
    out_ref[0] = _layer_norm(y, f_g[...], f_b[...]) * npm


def decoder_layer(dec_inp, enc_out, non_pad_mask, slf_attn_mask,
                  dec_enc_attn_mask, params, n_head, d_head):
    B, Lq, D = dec_inp.shape
    Lk = enc_out.shape[1]
    HD = n_head * d_head
    Di = params["ffn"]["w1"].shape[1]

    # Additive attention biases built once in the wrapper, stored as bf16
    # (half the mask DMA bytes).  Kept per-batch because the module takes
    # per-batch masks (they may contain padding, not just the causal pattern).
    neg = jnp.float32(-1e9)
    sbias = jnp.where(slf_attn_mask > 0, neg, 0.0).astype(jnp.bfloat16)
    ebias = jnp.where(dec_enc_attn_mask > 0, neg, 0.0).astype(jnp.bfloat16)
    dec_bf = dec_inp.astype(jnp.bfloat16)
    enc_bf = enc_out.astype(jnp.bfloat16)
    npm = non_pad_mask.astype(jnp.float32)

    kc_self = _pick_chunk(Lq)      # self-attn key length is Lq
    kc_enc = _pick_chunk(Lk)
    dc_ffn = _pick_chunk(Di)

    slf, enc, ffn = params["slf"], params["enc"], params["ffn"]
    kernel = functools.partial(decoder_layer_kernel, n_head=n_head,
                               d_head=d_head, kc_self=kc_self, kc_enc=kc_enc,
                               dc_ffn=dc_ffn)

    def rep(shape):
        # Grid-invariant weight block: single-buffered (index_map constant).
        return pl.BlockSpec(shape, lambda b: (0, 0),
                            pipeline_mode=pl.Buffered(1))

    in_specs = [
        pl.BlockSpec((1, Lq, D), lambda b: (b, 0, 0)),    # dec_inp (bf16)
        pl.BlockSpec((1, Lk, D), lambda b: (b, 0, 0)),    # enc_out (bf16)
        pl.BlockSpec((1, Lq, Lq), lambda b: (b, 0, 0)),   # self-attn bias
        pl.BlockSpec((1, Lq, Lk), lambda b: (b, 0, 0)),   # enc-dec attn bias
        pl.BlockSpec((1, Lq, 1), lambda b: (b, 0, 0)),    # non_pad_mask
    ]
    for _ in range(2):  # self-attn params, then enc-dec attn params
        in_specs += [rep((D, HD)), rep((D, HD)), rep((D, HD)),   # wq wk wv
                     rep((HD, D)),                               # wo
                     rep((1, D)), rep((1, D)), rep((1, D))]      # bo gamma beta
    in_specs += [rep((D, Di)), rep((1, Di)),                     # w1 b1
                 rep((Di, D)), rep((1, D)),                      # w2 b2
                 rep((1, D)), rep((1, D))]                       # gamma beta

    args = (dec_bf, enc_bf, sbias, ebias, npm,
            slf["wq"], slf["wk"], slf["wv"], slf["wo"],
            slf["bo"], slf["gamma"], slf["beta"],
            enc["wq"], enc["wk"], enc["wv"], enc["wo"],
            enc["bo"], enc["gamma"], enc["beta"],
            ffn["w1"], ffn["b1"], ffn["w2"], ffn["b2"],
            ffn["gamma"], ffn["beta"])

    # Advisory cost estimate so XLA can overlap the fused call with neighbours.
    flops = 2 * B * (3 * Lq * D * HD + 2 * Lq * Lq * HD + Lq * HD * D     # self
                     + Lq * D * HD + 2 * Lk * D * HD + 2 * Lq * Lk * HD
                     + Lq * HD * D                                        # enc
                     + 2 * Lq * D * Di)                                   # ffn
    transcendentals = B * n_head * (Lq * Lq + Lq * Lk)
    wbytes = (2 * ((3 * D * HD + HD * D) * 2 + 3 * D * 4)
              + (D * Di + Di * D) * 2 + (Di + 3 * D) * 4)
    blk_bytes = (Lq * D * 2 + Lk * D * 2 + Lq * Lq * 2 + Lq * Lk * 2
                 + Lq * 4 + Lq * D * 4)
    bytes_accessed = wbytes + B * blk_bytes

    # Explicit VMEM budget: resident (single-buffered) weights + double-buffered
    # per-batch activation blocks + headroom for live f32 intermediates.
    live_bytes = Lq * (6 * HD + 4 * max(kc_self, kc_enc, dc_ffn) + 16 * D)
    vmem_limit = int(min(max(2 * (wbytes + 2 * blk_bytes + live_bytes),
                             16 * 1024 * 1024),
                         48 * 1024 * 1024))

    return pl.pallas_call(
        kernel,
        out_shape=jax.ShapeDtypeStruct((B, Lq, D), jnp.float32),
        grid=(B,),
        in_specs=in_specs,
        out_specs=pl.BlockSpec((1, Lq, D), lambda b: (b, 0, 0)),
        compiler_params=pltpu.CompilerParams(
            dimension_semantics=("parallel",),
            vmem_limit_bytes=vmem_limit),
        cost_estimate=pl.CostEstimate(flops=flops,
                                      transcendentals=transcendentals,
                                      bytes_accessed=bytes_accessed),
    )(*args)


def init_params(key, d_model, d_inner, n_head, d_head):
    def nrm(k, shape, s=0.05):
        return (jax.random.normal(k, shape, jnp.float32) * s).astype(jnp.bfloat16)

    hd = n_head * d_head

    def attn_params(k):
        k1, k2, k3, k4 = jax.random.split(k, 4)
        return dict(
            wq=nrm(k1, (d_model, hd)),
            wk=nrm(k2, (d_model, hd)),
            wv=nrm(k3, (d_model, hd)),
            wo=nrm(k4, (hd, d_model)),
            bo=jnp.zeros((1, d_model), jnp.float32),
            gamma=jnp.ones((1, d_model), jnp.float32),
            beta=jnp.zeros((1, d_model), jnp.float32),
        )

    ka, kb, kc, kd = jax.random.split(key, 4)
    ffn = dict(
        w1=nrm(kc, (d_model, d_inner)),
        b1=jnp.zeros((1, d_inner), jnp.float32),
        w2=nrm(kd, (d_inner, d_model)),
        b2=jnp.zeros((1, d_model), jnp.float32),
        gamma=jnp.ones((1, d_model), jnp.float32),
        beta=jnp.zeros((1, d_model), jnp.float32),
    )
    return dict(slf=attn_params(ka), enc=attn_params(kb), ffn=ffn)


if __name__ == "__main__":
    B, Lq, Lk = 2, 8, 8
    d_model, d_inner, n_head, d_head = 32, 64, 4, 8

    key = jax.random.PRNGKey(0)
    kp, kx, ke = jax.random.split(key, 3)
    params = init_params(kp, d_model, d_inner, n_head, d_head)

    dec_inp = jax.random.normal(kx, (B, Lq, d_model), jnp.float32)
    enc_out = jax.random.normal(ke, (B, Lk, d_model), jnp.float32)

    # causal self-attention mask (1 => masked), zero cross-attention mask
    slf_attn_mask = jnp.broadcast_to(
        jnp.triu(jnp.ones((Lq, Lq), jnp.float32), k=1), (B, Lq, Lq))
    dec_enc_attn_mask = jnp.zeros((B, Lq, Lk), jnp.float32)
    # non_pad_mask: last position of each sequence is padding
    non_pad_mask = jnp.ones((B, Lq, 1), jnp.float32).at[:, -1, :].set(0.0)

    out = decoder_layer(dec_inp, enc_out, non_pad_mask, slf_attn_mask,
                        dec_enc_attn_mask, params, n_head, d_head)
    out = jax.block_until_ready(out)
    assert out.shape == (B, Lq, d_model)
    assert bool(jnp.all(jnp.isfinite(out)))
    print("KERNEL_OK")
</pallas_src>

<mosaic_0001>
module attributes {stable_mosaic.version = 11 : i64} {
  func.func @decoder_layer_kernel(%arg0: i32, %arg1: memref<1x8x32xbf16, #tpu.memory_space<vmem>>, %arg2: memref<1x8x32xbf16, #tpu.memory_space<vmem>>, %arg3: memref<1x8x8xbf16, #tpu.memory_space<vmem>>, %arg4: memref<1x8x8xbf16, #tpu.memory_space<vmem>>, %arg5: memref<1x8x1xf32, #tpu.memory_space<vmem>>, %arg6: memref<32x32xbf16, #tpu.memory_space<vmem>>, %arg7: memref<32x32xbf16, #tpu.memory_space<vmem>>, %arg8: memref<32x32xbf16, #tpu.memory_space<vmem>>, %arg9: memref<32x32xbf16, #tpu.memory_space<vmem>>, %arg10: memref<1x32xf32, #tpu.memory_space<vmem>>, %arg11: memref<1x32xf32, #tpu.memory_space<vmem>>, %arg12: memref<1x32xf32, #tpu.memory_space<vmem>>, %arg13: memref<32x32xbf16, #tpu.memory_space<vmem>>, %arg14: memref<32x32xbf16, #tpu.memory_space<vmem>>, %arg15: memref<32x32xbf16, #tpu.memory_space<vmem>>, %arg16: memref<32x32xbf16, #tpu.memory_space<vmem>>, %arg17: memref<1x32xf32, #tpu.memory_space<vmem>>, %arg18: memref<1x32xf32, #tpu.memory_space<vmem>>, %arg19: memref<1x32xf32, #tpu.memory_space<vmem>>, %arg20: memref<32x64xbf16, #tpu.memory_space<vmem>>, %arg21: memref<1x64xf32, #tpu.memory_space<vmem>>, %arg22: memref<64x32xbf16, #tpu.memory_space<vmem>>, %arg23: memref<1x32xf32, #tpu.memory_space<vmem>>, %arg24: memref<1x32xf32, #tpu.memory_space<vmem>>, %arg25: memref<1x32xf32, #tpu.memory_space<vmem>>, %arg26: memref<1x8x32xf32, #tpu.memory_space<vmem>>) attributes {dimension_semantics = [#tpu.dimension_semantics<parallel>], iteration_bounds = array<i64: 2>, scalar_prefetch = 0 : i64, scratch_operands = 0 : i64, tpu.core_type = #tpu.core_type<tc>, window_params = [{transform_indices = @transform_0, window_bounds = array<i64: 1, 8, 32>}, {transform_indices = @transform_1, window_bounds = array<i64: 1, 8, 32>}, {transform_indices = @transform_2, window_bounds = array<i64: 1, 8, 8>}, {transform_indices = @transform_3, window_bounds = array<i64: 1, 8, 8>}, {transform_indices = @transform_4, window_bounds = array<i64: 1, 8, 1>}, {pipeline_mode = #tpu.pipeline_mode<synchronous>, transform_indices = @transform_5, window_bounds = array<i64: 32, 32>}, {pipeline_mode = #tpu.pipeline_mode<synchronous>, transform_indices = @transform_6, window_bounds = array<i64: 32, 32>}, {pipeline_mode = #tpu.pipeline_mode<synchronous>, transform_indices = @transform_7, window_bounds = array<i64: 32, 32>}, {pipeline_mode = #tpu.pipeline_mode<synchronous>, transform_indices = @transform_8, window_bounds = array<i64: 32, 32>}, {pipeline_mode = #tpu.pipeline_mode<synchronous>, transform_indices = @transform_9, window_bounds = array<i64: 1, 32>}, {pipeline_mode = #tpu.pipeline_mode<synchronous>, transform_indices = @transform_10, window_bounds = array<i64: 1, 32>}, {pipeline_mode = #tpu.pipeline_mode<synchronous>, transform_indices = @transform_11, window_bounds = array<i64: 1, 32>}, {pipeline_mode = #tpu.pipeline_mode<synchronous>, transform_indices = @transform_12, window_bounds = array<i64: 32, 32>}, {pipeline_mode = #tpu.pipeline_mode<synchronous>, transform_indices = @transform_13, window_bounds = array<i64: 32, 32>}, {pipeline_mode = #tpu.pipeline_mode<synchronous>, transform_indices = @transform_14, window_bounds = array<i64: 32, 32>}, {pipeline_mode = #tpu.pipeline_mode<synchronous>, transform_indices = @transform_15, window_bounds = array<i64: 32, 32>}, {pipeline_mode = #tpu.pipeline_mode<synchronous>, transform_indices = @transform_16, window_bounds = array<i64: 1, 32>}, {pipeline_mode = #tpu.pipeline_mode<synchronous>, transform_indices = @transform_17, window_bounds = array<i64: 1, 32>}, {pipeline_mode = #tpu.pipeline_mode<synchronous>, transform_indices = @transform_18, window_bounds = array<i64: 1, 32>}, {pipeline_mode = #tpu.pipeline_mode<synchronous>, transform_indices = @transform_19, window_bounds = array<i64: 32, 64>}, {pipeline_mode = #tpu.pipeline_mode<synchronous>, transform_indices = @transform_20, window_bounds = array<i64: 1, 64>}, {pipeline_mode = #tpu.pipeline_mode<synchronous>, transform_indices = @transform_21, window_bounds = array<i64: 64, 32>}, {pipeline_mode = #tpu.pipeline_mode<synchronous>, transform_indices = @transform_22, window_bounds = array<i64: 1, 32>}, {pipeline_mode = #tpu.pipeline_mode<synchronous>, transform_indices = @transform_23, window_bounds = array<i64: 1, 32>}, {pipeline_mode = #tpu.pipeline_mode<synchronous>, transform_indices = @transform_24, window_bounds = array<i64: 1, 32>}, {transform_indices = @transform_25, window_bounds = array<i64: 1, 8, 32>}]} {
    %c0 = arith.constant 0 : index
    %c0_0 = arith.constant 0 : index
    %c0_1 = arith.constant 0 : index
    %0 = vector.load %arg1[%c0, %c0_0, %c0_1] : memref<1x8x32xbf16, #tpu.memory_space<vmem>>, vector<1x8x32xbf16>
    %1 = vector.shape_cast %0 : vector<1x8x32xbf16> to vector<8x32xbf16>
    %c0_2 = arith.constant 0 : index
    %c0_3 = arith.constant 0 : index
    %c0_4 = arith.constant 0 : index
    %2 = vector.load %arg2[%c0_2, %c0_3, %c0_4] : memref<1x8x32xbf16, #tpu.memory_space<vmem>>, vector<1x8x32xbf16>
    %3 = vector.shape_cast %2 : vector<1x8x32xbf16> to vector<8x32xbf16>
    %c0_5 = arith.constant 0 : index
    %c0_6 = arith.constant 0 : index
    %c0_7 = arith.constant 0 : index
    %4 = vector.load %arg5[%c0_5, %c0_6, %c0_7] : memref<1x8x1xf32, #tpu.memory_space<vmem>>, vector<1x8x1xf32>
    %5 = vector.shape_cast %4 : vector<1x8x1xf32> to vector<8x1xf32>
    %6 = arith.extf %1 : vector<8x32xbf16> to vector<8x32xf32>
    %c0_8 = arith.constant 0 : index
    %c0_9 = arith.constant 0 : index
    %7 = vector.load %arg6[%c0_8, %c0_9] : memref<32x32xbf16, #tpu.memory_space<vmem>>, vector<32x32xbf16>
    %cst = arith.constant dense<0.000000e+00> : vector<8x32xf32>
    %8 = tpu.matmul %1, %7, %cst {dimension_numbers = #tpu.dot_dimension_numbers<[1], [0], [0], [1], [0, 0, 1, 1], [], []>} : vector<8x32xbf16>, vector<32x32xbf16>, vector<8x32xf32> -> vector<8x32xf32>
    %cst_10 = arith.constant 0.353553385 : f32
    %9 = vector.broadcast %cst_10 : f32 to vector<8x32xf32>
    %10 = arith.mulf %8, %9 : vector<8x32xf32>
    %11 = arith.truncf %10 : vector<8x32xf32> to vector<8x32xbf16>
    %c0_11 = arith.constant 0 : index
    %c0_12 = arith.constant 0 : index
    %12 = vector.load %arg7[%c0_11, %c0_12] : memref<32x32xbf16, #tpu.memory_space<vmem>>, vector<32x32xbf16>
    %cst_13 = arith.constant dense<0.000000e+00> : vector<8x32xf32>
    %13 = tpu.matmul %1, %12, %cst_13 {dimension_numbers = #tpu.dot_dimension_numbers<[1], [0], [0], [1], [0, 0, 1, 1], [], []>} : vector<8x32xbf16>, vector<32x32xbf16>, vector<8x32xf32> -> vector<8x32xf32>
    %14 = arith.truncf %13 : vector<8x32xf32> to vector<8x32xbf16>
    %c0_14 = arith.constant 0 : index
    %c0_15 = arith.constant 0 : index
    %15 = vector.load %arg8[%c0_14, %c0_15] : memref<32x32xbf16, #tpu.memory_space<vmem>>, vector<32x32xbf16>
    %cst_16 = arith.constant dense<0.000000e+00> : vector<8x32xf32>
    %16 = tpu.matmul %1, %15, %cst_16 {dimension_numbers = #tpu.dot_dimension_numbers<[1], [0], [0], [1], [0, 0, 1, 1], [], []>} : vector<8x32xbf16>, vector<32x32xbf16>, vector<8x32xf32> -> vector<8x32xf32>
    %17 = arith.truncf %16 : vector<8x32xf32> to vector<8x32xbf16>
    %18 = vector.extract_strided_slice %11 {offsets = [0, 0], sizes = [8, 8], strides = [1, 1]} : vector<8x32xbf16> to vector<8x8xbf16>
    %19 = vector.extract_strided_slice %14 {offsets = [0, 0], sizes = [8, 8], strides = [1, 1]} : vector<8x32xbf16> to vector<8x8xbf16>
    %20 = vector.extract_strided_slice %17 {offsets = [0, 0], sizes = [8, 8], strides = [1, 1]} : vector<8x32xbf16> to vector<8x8xbf16>
    %cst_17 = arith.constant -1.000000e+30 : f32
    %21 = vector.broadcast %cst_17 : f32 to vector<8x1xf32>
    %cst_18 = arith.constant 0.000000e+00 : f32
    %22 = vector.broadcast %cst_18 : f32 to vector<8x1xf32>
    %cst_19 = arith.constant 0.000000e+00 : f32
    %23 = vector.broadcast %cst_19 : f32 to vector<8x8xf32>
    %cst_20 = arith.constant dense<0.000000e+00> : vector<8x8xf32>
    %24 = tpu.matmul %18, %19, %cst_20 {dimension_numbers = #tpu.dot_dimension_numbers<[1], [1], [0], [0], [0, 0, 1, 0], [], []>} : vector<8x8xbf16>, vector<8x8xbf16>, vector<8x8xf32> -> vector<8x8xf32>
    %c0_21 = arith.constant 0 : index
    %c0_22 = arith.constant 0 : index
    %c0_23 = arith.constant 0 : index
    %25 = vector.load %arg3[%c0_21, %c0_22, %c0_23] : memref<1x8x8xbf16, #tpu.memory_space<vmem>>, vector<1x8x8xbf16>
    %26 = vector.shape_cast %25 : vector<1x8x8xbf16> to vector<8x8xbf16>
    %27 = arith.extf %26 : vector<8x8xbf16> to vector<8x8xf32>
    %28 = arith.addf %24, %27 : vector<8x8xf32>
    %cst_24 = arith.constant dense<0xFF800000> : vector<8xf32>
    %29 = vector.multi_reduction <maximumf>, %28, %cst_24 [1] : vector<8x8xf32> to vector<8xf32>
    %30 = vector.shape_cast %29 : vector<8xf32> to vector<8x1xf32>
    %31 = arith.maximumf %21, %30 : vector<8x1xf32>
    %32 = arith.subf %21, %31 : vector<8x1xf32>
    %33 = math.exp %32 : vector<8x1xf32>
    %34 = vector.broadcast %31 : vector<8x1xf32> to vector<8x8xf32>
    %35 = arith.subf %28, %34 : vector<8x8xf32>
    %36 = math.exp %35 : vector<8x8xf32>
    %37 = arith.mulf %33, %22 : vector<8x1xf32>
    %cst_25 = arith.constant dense<0.000000e+00> : vector<8xf32>
    %38 = vector.multi_reduction <add>, %36, %cst_25 [1] : vector<8x8xf32> to vector<8xf32>
    %39 = vector.shape_cast %38 : vector<8xf32> to vector<8x1xf32>
    %40 = arith.addf %37, %39 : vector<8x1xf32>
    %41 = vector.broadcast %33 : vector<8x1xf32> to vector<8x8xf32>
    %42 = arith.mulf %41, %23 : vector<8x8xf32>
    %43 = arith.truncf %36 : vector<8x8xf32> to vector<8x8xbf16>
    %cst_26 = arith.constant dense<0.000000e+00> : vector<8x8xf32>
    %44 = tpu.matmul %43, %20, %cst_26 {dimension_numbers = #tpu.dot_dimension_numbers<[1], [0], [0], [1], [0, 0, 1, 1], [], []>} : vector<8x8xbf16>, vector<8x8xbf16>, vector<8x8xf32> -> vector<8x8xf32>
    %45 = arith.addf %42, %44 : vector<8x8xf32>
    %46 = tpu.reciprocal %40 {approx = true} : vector<8x1xf32> -> vector<8x1xf32>
    %47 = vector.broadcast %46 : vector<8x1xf32> to vector<8x8xf32>
    %48 = arith.mulf %45, %47 : vector<8x8xf32>
    %49 = arith.truncf %48 : vector<8x8xf32> to vector<8x8xbf16>
    %50 = vector.extract_strided_slice %11 {offsets = [0, 8], sizes = [8, 8], strides = [1, 1]} : vector<8x32xbf16> to vector<8x8xbf16>
    %51 = vector.extract_strided_slice %14 {offsets = [0, 8], sizes = [8, 8], strides = [1, 1]} : vector<8x32xbf16> to vector<8x8xbf16>
    %52 = vector.extract_strided_slice %17 {offsets = [0, 8], sizes = [8, 8], strides = [1, 1]} : vector<8x32xbf16> to vector<8x8xbf16>
    %cst_27 = arith.constant -1.000000e+30 : f32
    %53 = vector.broadcast %cst_27 : f32 to vector<8x1xf32>
    %cst_28 = arith.constant 0.000000e+00 : f32
    %54 = vector.broadcast %cst_28 : f32 to vector<8x1xf32>
    %cst_29 = arith.constant 0.000000e+00 : f32
    %55 = vector.broadcast %cst_29 : f32 to vector<8x8xf32>
    %cst_30 = arith.constant dense<0.000000e+00> : vector<8x8xf32>
    %56 = tpu.matmul %50, %51, %cst_30 {dimension_numbers = #tpu.dot_dimension_numbers<[1], [1], [0], [0], [0, 0, 1, 0], [], []>} : vector<8x8xbf16>, vector<8x8xbf16>, vector<8x8xf32> -> vector<8x8xf32>
    %c0_31 = arith.constant 0 : index
    %c0_32 = arith.constant 0 : index
    %c0_33 = arith.constant 0 : index
    %57 = vector.load %arg3[%c0_31, %c0_32, %c0_33] : memref<1x8x8xbf16, #tpu.memory_space<vmem>>, vector<1x8x8xbf16>
    %58 = vector.shape_cast %57 : vector<1x8x8xbf16> to vector<8x8xbf16>
    %59 = arith.extf %58 : vector<8x8xbf16> to vector<8x8xf32>
    %60 = arith.addf %56, %59 : vector<8x8xf32>
    %cst_34 = arith.constant dense<0xFF800000> : vector<8xf32>
    %61 = vector.multi_reduction <maximumf>, %60, %cst_34 [1] : vector<8x8xf32> to vector<8xf32>
    %62 = vector.shape_cast %61 : vector<8xf32> to vector<8x1xf32>
    %63 = arith.maximumf %53, %62 : vector<8x1xf32>
    %64 = arith.subf %53, %63 : vector<8x1xf32>
    %65 = math.exp %64 : vector<8x1xf32>
    %66 = vector.broadcast %63 : vector<8x1xf32> to vector<8x8xf32>
    %67 = arith.subf %60, %66 : vector<8x8xf32>
    %68 = math.exp %67 : vector<8x8xf32>
    %69 = arith.mulf %65, %54 : vector<8x1xf32>
    %cst_35 = arith.constant dense<0.000000e+00> : vector<8xf32>
    %70 = vector.multi_reduction <add>, %68, %cst_35 [1] : vector<8x8xf32> to vector<8xf32>
    %71 = vector.shape_cast %70 : vector<8xf32> to vector<8x1xf32>
    %72 = arith.addf %69, %71 : vector<8x1xf32>
    %73 = vector.broadcast %65 : vector<8x1xf32> to vector<8x8xf32>
    %74 = arith.mulf %73, %55 : vector<8x8xf32>
    %75 = arith.truncf %68 : vector<8x8xf32> to vector<8x8xbf16>
    %cst_36 = arith.constant dense<0.000000e+00> : vector<8x8xf32>
    %76 = tpu.matmul %75, %52, %cst_36 {dimension_numbers = #tpu.dot_dimension_numbers<[1], [0], [0], [1], [0, 0, 1, 1], [], []>} : vector<8x8xbf16>, vector<8x8xbf16>, vector<8x8xf32> -> vector<8x8xf32>
    %77 = arith.addf %74, %76 : vector<8x8xf32>
    %78 = tpu.reciprocal %72 {approx = true} : vector<8x1xf32> -> vector<8x1xf32>
    %79 = vector.broadcast %78 : vector<8x1xf32> to vector<8x8xf32>
    %80 = arith.mulf %77, %79 : vector<8x8xf32>
    %81 = arith.truncf %80 : vector<8x8xf32> to vector<8x8xbf16>
    %82 = vector.extract_strided_slice %11 {offsets = [0, 16], sizes = [8, 8], strides = [1, 1]} : vector<8x32xbf16> to vector<8x8xbf16>
    %83 = vector.extract_strided_slice %14 {offsets = [0, 16], sizes = [8, 8], strides = [1, 1]} : vector<8x32xbf16> to vector<8x8xbf16>
    %84 = vector.extract_strided_slice %17 {offsets = [0, 16], sizes = [8, 8], strides = [1, 1]} : vector<8x32xbf16> to vector<8x8xbf16>
    %cst_37 = arith.constant -1.000000e+30 : f32
    %85 = vector.broadcast %cst_37 : f32 to vector<8x1xf32>
    %cst_38 = arith.constant 0.000000e+00 : f32
    %86 = vector.broadcast %cst_38 : f32 to vector<8x1xf32>
    %cst_39 = arith.constant 0.000000e+00 : f32
    %87 = vector.broadcast %cst_39 : f32 to vector<8x8xf32>
    %cst_40 = arith.constant dense<0.000000e+00> : vector<8x8xf32>
    %88 = tpu.matmul %82, %83, %cst_40 {dimension_numbers = #tpu.dot_dimension_numbers<[1], [1], [0], [0], [0, 0, 1, 0], [], []>} : vector<8x8xbf16>, vector<8x8xbf16>, vector<8x8xf32> -> vector<8x8xf32>
    %c0_41 = arith.constant 0 : index
    %c0_42 = arith.constant 0 : index
    %c0_43 = arith.constant 0 : index
    %89 = vector.load %arg3[%c0_41, %c0_42, %c0_43] : memref<1x8x8xbf16, #tpu.memory_space<vmem>>, vector<1x8x8xbf16>
    %90 = vector.shape_cast %89 : vector<1x8x8xbf16> to vector<8x8xbf16>
    %91 = arith.extf %90 : vector<8x8xbf16> to vector<8x8xf32>
    %92 = arith.addf %88, %91 : vector<8x8xf32>
    %cst_44 = arith.constant dense<0xFF800000> : vector<8xf32>
    %93 = vector.multi_reduction <maximumf>, %92, %cst_44 [1] : vector<8x8xf32> to vector<8xf32>
    %94 = vector.shape_cast %93 : vector<8xf32> to vector<8x1xf32>
    %95 = arith.maximumf %85, %94 : vector<8x1xf32>
    %96 = arith.subf %85, %95 : vector<8x1xf32>
    %97 = math.exp %96 : vector<8x1xf32>
    %98 = vector.broadcast %95 : vector<8x1xf32> to vector<8x8xf32>
    %99 = arith.subf %92, %98 : vector<8x8xf32>
    %100 = math.exp %99 : vector<8x8xf32>
    %101 = arith.mulf %97, %86 : vector<8x1xf32>
    %cst_45 = arith.constant dense<0.000000e+00> : vector<8xf32>
    %102 = vector.multi_reduction <add>, %100, %cst_45 [1] : vector<8x8xf32> to vector<8xf32>
    %103 = vector.shape_cast %102 : vector<8xf32> to vector<8x1xf32>
    %104 = arith.addf %101, %103 : vector<8x1xf32>
    %105 = vector.broadcast %97 : vector<8x1xf32> to vector<8x8xf32>
    %106 = arith.mulf %105, %87 : vector<8x8xf32>
    %107 = arith.truncf %100 : vector<8x8xf32> to vector<8x8xbf16>
    %cst_46 = arith.constant dense<0.000000e+00> : vector<8x8xf32>
    %108 = tpu.matmul %107, %84, %cst_46 {dimension_numbers = #tpu.dot_dimension_numbers<[1], [0], [0], [1], [0, 0, 1, 1], [], []>} : vector<8x8xbf16>, vector<8x8xbf16>, vector<8x8xf32> -> vector<8x8xf32>
    %109 = arith.addf %106, %108 : vector<8x8xf32>
    %110 = tpu.reciprocal %104 {approx = true} : vector<8x1xf32> -> vector<8x1xf32>
    %111 = vector.broadcast %110 : vector<8x1xf32> to vector<8x8xf32>
    %112 = arith.mulf %109, %111 : vector<8x8xf32>
    %113 = arith.truncf %112 : vector<8x8xf32> to vector<8x8xbf16>
    %114 = vector.extract_strided_slice %11 {offsets = [0, 24], sizes = [8, 8], strides = [1, 1]} : vector<8x32xbf16> to vector<8x8xbf16>
    %115 = vector.extract_strided_slice %14 {offsets = [0, 24], sizes = [8, 8], strides = [1, 1]} : vector<8x32xbf16> to vector<8x8xbf16>
    %116 = vector.extract_strided_slice %17 {offsets = [0, 24], sizes = [8, 8], strides = [1, 1]} : vector<8x32xbf16> to vector<8x8xbf16>
    %cst_47 = arith.constant -1.000000e+30 : f32
    %117 = vector.broadcast %cst_47 : f32 to vector<8x1xf32>
    %cst_48 = arith.constant 0.000000e+00 : f32
    %118 = vector.broadcast %cst_48 : f32 to vector<8x1xf32>
    %cst_49 = arith.constant 0.000000e+00 : f32
    %119 = vector.broadcast %cst_49 : f32 to vector<8x8xf32>
    %cst_50 = arith.constant dense<0.000000e+00> : vector<8x8xf32>
    %120 = tpu.matmul %114, %115, %cst_50 {dimension_numbers = #tpu.dot_dimension_numbers<[1], [1], [0], [0], [0, 0, 1, 0], [], []>} : vector<8x8xbf16>, vector<8x8xbf16>, vector<8x8xf32> -> vector<8x8xf32>
    %c0_51 = arith.constant 0 : index
    %c0_52 = arith.constant 0 : index
    %c0_53 = arith.constant 0 : index
    %121 = vector.load %arg3[%c0_51, %c0_52, %c0_53] : memref<1x8x8xbf16, #tpu.memory_space<vmem>>, vector<1x8x8xbf16>
    %122 = vector.shape_cast %121 : vector<1x8x8xbf16> to vector<8x8xbf16>
    %123 = arith.extf %122 : vector<8x8xbf16> to vector<8x8xf32>
    %124 = arith.addf %120, %123 : vector<8x8xf32>
    %cst_54 = arith.constant dense<0xFF800000> : vector<8xf32>
    %125 = vector.multi_reduction <maximumf>, %124, %cst_54 [1] : vector<8x8xf32> to vector<8xf32>
    %126 = vector.shape_cast %125 : vector<8xf32> to vector<8x1xf32>
    %127 = arith.maximumf %117, %126 : vector<8x1xf32>
    %128 = arith.subf %117, %127 : vector<8x1xf32>
    %129 = math.exp %128 : vector<8x1xf32>
    %130 = vector.broadcast %127 : vector<8x1xf32> to vector<8x8xf32>
    %131 = arith.subf %124, %130 : vector<8x8xf32>
    %132 = math.exp %131 : vector<8x8xf32>
    %133 = arith.mulf %129, %118 : vector<8x1xf32>
    %cst_55 = arith.constant dense<0.000000e+00> : vector<8xf32>
    %134 = vector.multi_reduction <add>, %132, %cst_55 [1] : vector<8x8xf32> to vector<8xf32>
    %135 = vector.shape_cast %134 : vector<8xf32> to vector<8x1xf32>
    %136 = arith.addf %133, %135 : vector<8x1xf32>
    %137 = vector.broadcast %129 : vector<8x1xf32> to vector<8x8xf32>
    %138 = arith.mulf %137, %119 : vector<8x8xf32>
    %139 = arith.truncf %132 : vector<8x8xf32> to vector<8x8xbf16>
    %cst_56 = arith.constant dense<0.000000e+00> : vector<8x8xf32>
    %140 = tpu.matmul %139, %116, %cst_56 {dimension_numbers = #tpu.dot_dimension_numbers<[1], [0], [0], [1], [0, 0, 1, 1], [], []>} : vector<8x8xbf16>, vector<8x8xbf16>, vector<8x8xf32> -> vector<8x8xf32>
    %141 = arith.addf %138, %140 : vector<8x8xf32>
    %142 = tpu.reciprocal %136 {approx = true} : vector<8x1xf32> -> vector<8x1xf32>
    %143 = vector.broadcast %142 : vector<8x1xf32> to vector<8x8xf32>
    %144 = arith.mulf %141, %143 : vector<8x8xf32>
    %145 = arith.truncf %144 : vector<8x8xf32> to vector<8x8xbf16>
    %146 = tpu.concatenate %49, %81, %113, %145 in 1 : vector<8x8xbf16>, vector<8x8xbf16>, vector<8x8xbf16>, vector<8x8xbf16> -> vector<8x32xbf16>
    %c0_57 = arith.constant 0 : index
    %c0_58 = arith.constant 0 : index
    %147 = vector.load %arg9[%c0_57, %c0_58] : memref<32x32xbf16, #tpu.memory_space<vmem>>, vector<32x32xbf16>
    %cst_59 = arith.constant dense<0.000000e+00> : vector<8x32xf32>
    %148 = tpu.matmul %146, %147, %cst_59 {dimension_numbers = #tpu.dot_dimension_numbers<[1], [0], [0], [1], [0, 0, 1, 1], [], []>} : vector<8x32xbf16>, vector<32x32xbf16>, vector<8x32xf32> -> vector<8x32xf32>
    %c0_60 = arith.constant 0 : index
    %c0_61 = arith.constant 0 : index
    %149 = vector.load %arg10[%c0_60, %c0_61] : memref<1x32xf32, #tpu.memory_space<vmem>>, vector<1x32xf32>
    %150 = vector.broadcast %149 : vector<1x32xf32> to vector<8x32xf32>
    %151 = arith.addf %148, %150 : vector<8x32xf32>
    %152 = arith.addf %151, %6 : vector<8x32xf32>
    %c0_62 = arith.constant 0 : index
    %c0_63 = arith.constant 0 : index
    %153 = vector.load %arg11[%c0_62, %c0_63] : memref<1x32xf32, #tpu.memory_space<vmem>>, vector<1x32xf32>
    %c0_64 = arith.constant 0 : index
    %c0_65 = arith.constant 0 : index
    %154 = vector.load %arg12[%c0_64, %c0_65] : memref<1x32xf32, #tpu.memory_space<vmem>>, vector<1x32xf32>
    %cst_66 = arith.constant dense<0.000000e+00> : vector<8xf32>
    %155 = vector.multi_reduction <add>, %152, %cst_66 [1] : vector<8x32xf32> to vector<8xf32>
    %156 = vector.shape_cast %155 : vector<8xf32> to vector<8x1xf32>
    %cst_67 = arith.constant 3.200000e+01 : f32
    %157 = vector.broadcast %cst_67 : f32 to vector<8x1xf32>
    %158 = arith.divf %156, %157 : vector<8x1xf32>
    %159 = vector.broadcast %158 : vector<8x1xf32> to vector<8x32xf32>
    %160 = arith.subf %152, %159 : vector<8x32xf32>
    %161 = arith.mulf %160, %160 : vector<8x32xf32>
    %cst_68 = arith.constant dense<0.000000e+00> : vector<8xf32>
    %162 = vector.multi_reduction <add>, %161, %cst_68 [1] : vector<8x32xf32> to vector<8xf32>
    %163 = vector.shape_cast %162 : vector<8xf32> to vector<8x1xf32>
    %cst_69 = arith.constant 3.200000e+01 : f32
    %164 = vector.broadcast %cst_69 : f32 to vector<8x1xf32>
    %165 = arith.divf %163, %164 : vector<8x1xf32>
    %166 = vector.broadcast %158 : vector<8x1xf32> to vector<8x32xf32>
    %167 = arith.subf %152, %166 : vector<8x32xf32>
    %cst_70 = arith.constant 9.99999974E-6 : f32
    %168 = vector.broadcast %cst_70 : f32 to vector<8x1xf32>
    %169 = arith.addf %165, %168 : vector<8x1xf32>
    %170 = math.rsqrt %169 : vector<8x1xf32>
    %171 = vector.broadcast %170 : vector<8x1xf32> to vector<8x32xf32>
    %172 = arith.mulf %167, %171 : vector<8x32xf32>
    %173 = vector.broadcast %153 : vector<1x32xf32> to vector<8x32xf32>
    %174 = arith.mulf %172, %173 : vector<8x32xf32>
    %175 = vector.broadcast %154 : vector<1x32xf32> to vector<8x32xf32>
    %176 = arith.addf %174, %175 : vector<8x32xf32>
    %177 = vector.broadcast %5 : vector<8x1xf32> to vector<8x32xf32>
    %178 = arith.mulf %176, %177 : vector<8x32xf32>
    %179 = arith.truncf %178 : vector<8x32xf32> to vector<8x32xbf16>
    %c0_71 = arith.constant 0 : index
    %c0_72 = arith.constant 0 : index
    %180 = vector.load %arg13[%c0_71, %c0_72] : memref<32x32xbf16, #tpu.memory_space<vmem>>, vector<32x32xbf16>
    %cst_73 = arith.constant dense<0.000000e+00> : vector<8x32xf32>
    %181 = tpu.matmul %179, %180, %cst_73 {dimension_numbers = #tpu.dot_dimension_numbers<[1], [0], [0], [1], [0, 0, 1, 1], [], []>} : vector<8x32xbf16>, vector<32x32xbf16>, vector<8x32xf32> -> vector<8x32xf32>
    %cst_74 = arith.constant 0.353553385 : f32
    %182 = vector.broadcast %cst_74 : f32 to vector<8x32xf32>
    %183 = arith.mulf %181, %182 : vector<8x32xf32>
    %184 = arith.truncf %183 : vector<8x32xf32> to vector<8x32xbf16>
    %c0_75 = arith.constant 0 : index
    %c0_76 = arith.constant 0 : index
    %185 = vector.load %arg14[%c0_75, %c0_76] : memref<32x32xbf16, #tpu.memory_space<vmem>>, vector<32x32xbf16>
    %cst_77 = arith.constant dense<0.000000e+00> : vector<8x32xf32>
    %186 = tpu.matmul %3, %185, %cst_77 {dimension_numbers = #tpu.dot_dimension_numbers<[1], [0], [0], [1], [0, 0, 1, 1], [], []>} : vector<8x32xbf16>, vector<32x32xbf16>, vector<8x32xf32> -> vector<8x32xf32>
    %187 = arith.truncf %186 : vector<8x32xf32> to vector<8x32xbf16>
    %c0_78 = arith.constant 0 : index
    %c0_79 = arith.constant 0 : index
    %188 = vector.load %arg15[%c0_78, %c0_79] : memref<32x32xbf16, #tpu.memory_space<vmem>>, vector<32x32xbf16>
    %cst_80 = arith.constant dense<0.000000e+00> : vector<8x32xf32>
    %189 = tpu.matmul %3, %188, %cst_80 {dimension_numbers = #tpu.dot_dimension_numbers<[1], [0], [0], [1], [0, 0, 1, 1], [], []>} : vector<8x32xbf16>, vector<32x32xbf16>, vector<8x32xf32> -> vector<8x32xf32>
    %190 = arith.truncf %189 : vector<8x32xf32> to vector<8x32xbf16>
    %191 = vector.extract_strided_slice %184 {offsets = [0, 0], sizes = [8, 8], strides = [1, 1]} : vector<8x32xbf16> to vector<8x8xbf16>
    %192 = vector.extract_strided_slice %187 {offsets = [0, 0], sizes = [8, 8], strides = [1, 1]} : vector<8x32xbf16> to vector<8x8xbf16>
    %193 = vector.extract_strided_slice %190 {offsets = [0, 0], sizes = [8, 8], strides = [1, 1]} : vector<8x32xbf16> to vector<8x8xbf16>
    %cst_81 = arith.constant -1.000000e+30 : f32
    %194 = vector.broadcast %cst_81 : f32 to vector<8x1xf32>
    %cst_82 = arith.constant 0.000000e+00 : f32
    %195 = vector.broadcast %cst_82 : f32 to vector<8x1xf32>
    %cst_83 = arith.constant 0.000000e+00 : f32
    %196 = vector.broadcast %cst_83 : f32 to vector<8x8xf32>
    %cst_84 = arith.constant dense<0.000000e+00> : vector<8x8xf32>
    %197 = tpu.matmul %191, %192, %cst_84 {dimension_numbers = #tpu.dot_dimension_numbers<[1], [1], [0], [0], [0, 0, 1, 0], [], []>} : vector<8x8xbf16>, vector<8x8xbf16>, vector<8x8xf32> -> vector<8x8xf32>
    %c0_85 = arith.constant 0 : index
    %c0_86 = arith.constant 0 : index
    %c0_87 = arith.constant 0 : index
    %198 = vector.load %arg4[%c0_85, %c0_86, %c0_87] : memref<1x8x8xbf16, #tpu.memory_space<vmem>>, vector<1x8x8xbf16>
    %199 = vector.shape_cast %198 : vector<1x8x8xbf16> to vector<8x8xbf16>
    %200 = arith.extf %199 : vector<8x8xbf16> to vector<8x8xf32>
    %201 = arith.addf %197, %200 : vector<8x8xf32>
    %cst_88 = arith.constant dense<0xFF800000> : vector<8xf32>
    %202 = vector.multi_reduction <maximumf>, %201, %cst_88 [1] : vector<8x8xf32> to vector<8xf32>
    %203 = vector.shape_cast %202 : vector<8xf32> to vector<8x1xf32>
    %204 = arith.maximumf %194, %203 : vector<8x1xf32>
    %205 = arith.subf %194, %204 : vector<8x1xf32>
    %206 = math.exp %205 : vector<8x1xf32>
    %207 = vector.broadcast %204 : vector<8x1xf32> to vector<8x8xf32>
    %208 = arith.subf %201, %207 : vector<8x8xf32>
    %209 = math.exp %208 : vector<8x8xf32>
    %210 = arith.mulf %206, %195 : vector<8x1xf32>
    %cst_89 = arith.constant dense<0.000000e+00> : vector<8xf32>
    %211 = vector.multi_reduction <add>, %209, %cst_89 [1] : vector<8x8xf32> to vector<8xf32>
    %212 = vector.shape_cast %211 : vector<8xf32> to vector<8x1xf32>
    %213 = arith.addf %210, %212 : vector<8x1xf32>
    %214 = vector.broadcast %206 : vector<8x1xf32> to vector<8x8xf32>
    %215 = arith.mulf %214, %196 : vector<8x8xf32>
    %216 = arith.truncf %209 : vector<8x8xf32> to vector<8x8xbf16>
    %cst_90 = arith.constant dense<0.000000e+00> : vector<8x8xf32>
    %217 = tpu.matmul %216, %193, %cst_90 {dimension_numbers = #tpu.dot_dimension_numbers<[1], [0], [0], [1], [0, 0, 1, 1], [], []>} : vector<8x8xbf16>, vector<8x8xbf16>, vector<8x8xf32> -> vector<8x8xf32>
    %218 = arith.addf %215, %217 : vector<8x8xf32>
    %219 = tpu.reciprocal %213 {approx = true} : vector<8x1xf32> -> vector<8x1xf32>
    %220 = vector.broadcast %219 : vector<8x1xf32> to vector<8x8xf32>
    %221 = arith.mulf %218, %220 : vector<8x8xf32>
    %222 = arith.truncf %221 : vector<8x8xf32> to vector<8x8xbf16>
    %223 = vector.extract_strided_slice %184 {offsets = [0, 8], sizes = [8, 8], strides = [1, 1]} : vector<8x32xbf16> to vector<8x8xbf16>
    %224 = vector.extract_strided_slice %187 {offsets = [0, 8], sizes = [8, 8], strides = [1, 1]} : vector<8x32xbf16> to vector<8x8xbf16>
    %225 = vector.extract_strided_slice %190 {offsets = [0, 8], sizes = [8, 8], strides = [1, 1]} : vector<8x32xbf16> to vector<8x8xbf16>
    %cst_91 = arith.constant -1.000000e+30 : f32
    %226 = vector.broadcast %cst_91 : f32 to vector<8x1xf32>
    %cst_92 = arith.constant 0.000000e+00 : f32
    %227 = vector.broadcast %cst_92 : f32 to vector<8x1xf32>
    %cst_93 = arith.constant 0.000000e+00 : f32
    %228 = vector.broadcast %cst_93 : f32 to vector<8x8xf32>
    %cst_94 = arith.constant dense<0.000000e+00> : vector<8x8xf32>
    %229 = tpu.matmul %223, %224, %cst_94 {dimension_numbers = #tpu.dot_dimension_numbers<[1], [1], [0], [0], [0, 0, 1, 0], [], []>} : vector<8x8xbf16>, vector<8x8xbf16>, vector<8x8xf32> -> vector<8x8xf32>
    %c0_95 = arith.constant 0 : index
    %c0_96 = arith.constant 0 : index
    %c0_97 = arith.constant 0 : index
    %230 = vector.load %arg4[%c0_95, %c0_96, %c0_97] : memref<1x8x8xbf16, #tpu.memory_space<vmem>>, vector<1x8x8xbf16>
    %231 = vector.shape_cast %230 : vector<1x8x8xbf16> to vector<8x8xbf16>
    %232 = arith.extf %231 : vector<8x8xbf16> to vector<8x8xf32>
    %233 = arith.addf %229, %232 : vector<8x8xf32>
    %cst_98 = arith.constant dense<0xFF800000> : vector<8xf32>
    %234 = vector.multi_reduction <maximumf>, %233, %cst_98 [1] : vector<8x8xf32> to vector<8xf32>
    %235 = vector.shape_cast %234 : vector<8xf32> to vector<8x1xf32>
    %236 = arith.maximumf %226, %235 : vector<8x1xf32>
    %237 = arith.subf %226, %236 : vector<8x1xf32>
    %238 = math.exp %237 : vector<8x1xf32>
    %239 = vector.broadcast %236 : vector<8x1xf32> to vector<8x8xf32>
    %240 = arith.subf %233, %239 : vector<8x8xf32>
    %241 = math.exp %240 : vector<8x8xf32>
    %242 = arith.mulf %238, %227 : vector<8x1xf32>
    %cst_99 = arith.constant dense<0.000000e+00> : vector<8xf32>
    %243 = vector.multi_reduction <add>, %241, %cst_99 [1] : vector<8x8xf32> to vector<8xf32>
    %244 = vector.shape_cast %243 : vector<8xf32> to vector<8x1xf32>
    %245 = arith.addf %242, %244 : vector<8x1xf32>
    %246 = vector.broadcast %238 : vector<8x1xf32> to vector<8x8xf32>
    %247 = arith.mulf %246, %228 : vector<8x8xf32>
    %248 = arith.truncf %241 : vector<8x8xf32> to vector<8x8xbf16>
    %cst_100 = arith.constant dense<0.000000e+00> : vector<8x8xf32>
    %249 = tpu.matmul %248, %225, %cst_100 {dimension_numbers = #tpu.dot_dimension_numbers<[1], [0], [0], [1], [0, 0, 1, 1], [], []>} : vector<8x8xbf16>, vector<8x8xbf16>, vector<8x8xf32> -> vector<8x8xf32>
    %250 = arith.addf %247, %249 : vector<8x8xf32>
    %251 = tpu.reciprocal %245 {approx = true} : vector<8x1xf32> -> vector<8x1xf32>
    %252 = vector.broadcast %251 : vector<8x1xf32> to vector<8x8xf32>
    %253 = arith.mulf %250, %252 : vector<8x8xf32>
    %254 = arith.truncf %253 : vector<8x8xf32> to vector<8x8xbf16>
    %255 = vector.extract_strided_slice %184 {offsets = [0, 16], sizes = [8, 8], strides = [1, 1]} : vector<8x32xbf16> to vector<8x8xbf16>
    %256 = vector.extract_strided_slice %187 {offsets = [0, 16], sizes = [8, 8], strides = [1, 1]} : vector<8x32xbf16> to vector<8x8xbf16>
    %257 = vector.extract_strided_slice %190 {offsets = [0, 16], sizes = [8, 8], strides = [1, 1]} : vector<8x32xbf16> to vector<8x8xbf16>
    %cst_101 = arith.constant -1.000000e+30 : f32
    %258 = vector.broadcast %cst_101 : f32 to vector<8x1xf32>
    %cst_102 = arith.constant 0.000000e+00 : f32
    %259 = vector.broadcast %cst_102 : f32 to vector<8x1xf32>
    %cst_103 = arith.constant 0.000000e+00 : f32
    %260 = vector.broadcast %cst_103 : f32 to vector<8x8xf32>
    %cst_104 = arith.constant dense<0.000000e+00> : vector<8x8xf32>
    %261 = tpu.matmul %255, %256, %cst_104 {dimension_numbers = #tpu.dot_dimension_numbers<[1], [1], [0], [0], [0, 0, 1, 0], [], []>} : vector<8x8xbf16>, vector<8x8xbf16>, vector<8x8xf32> -> vector<8x8xf32>
    %c0_105 = arith.constant 0 : index
    %c0_106 = arith.constant 0 : index
    %c0_107 = arith.constant 0 : index
    %262 = vector.load %arg4[%c0_105, %c0_106, %c0_107] : memref<1x8x8xbf16, #tpu.memory_space<vmem>>, vector<1x8x8xbf16>
    %263 = vector.shape_cast %262 : vector<1x8x8xbf16> to vector<8x8xbf16>
    %264 = arith.extf %263 : vector<8x8xbf16> to vector<8x8xf32>
    %265 = arith.addf %261, %264 : vector<8x8xf32>
    %cst_108 = arith.constant dense<0xFF800000> : vector<8xf32>
    %266 = vector.multi_reduction <maximumf>, %265, %cst_108 [1] : vector<8x8xf32> to vector<8xf32>
    %267 = vector.shape_cast %266 : vector<8xf32> to vector<8x1xf32>
    %268 = arith.maximumf %258, %267 : vector<8x1xf32>
    %269 = arith.subf %258, %268 : vector<8x1xf32>
    %270 = math.exp %269 : vector<8x1xf32>
    %271 = vector.broadcast %268 : vector<8x1xf32> to vector<8x8xf32>
    %272 = arith.subf %265, %271 : vector<8x8xf32>
    %273 = math.exp %272 : vector<8x8xf32>
    %274 = arith.mulf %270, %259 : vector<8x1xf32>
    %cst_109 = arith.constant dense<0.000000e+00> : vector<8xf32>
    %275 = vector.multi_reduction <add>, %273, %cst_109 [1] : vector<8x8xf32> to vector<8xf32>
    %276 = vector.shape_cast %275 : vector<8xf32> to vector<8x1xf32>
    %277 = arith.addf %274, %276 : vector<8x1xf32>
    %278 = vector.broadcast %270 : vector<8x1xf32> to vector<8x8xf32>
    %279 = arith.mulf %278, %260 : vector<8x8xf32>
    %280 = arith.truncf %273 : vector<8x8xf32> to vector<8x8xbf16>
    %cst_110 = arith.constant dense<0.000000e+00> : vector<8x8xf32>
    %281 = tpu.matmul %280, %257, %cst_110 {dimension_numbers = #tpu.dot_dimension_numbers<[1], [0], [0], [1], [0, 0, 1, 1], [], []>} : vector<8x8xbf16>, vector<8x8xbf16>, vector<8x8xf32> -> vector<8x8xf32>
    %282 = arith.addf %279, %281 : vector<8x8xf32>
    %283 = tpu.reciprocal %277 {approx = true} : vector<8x1xf32> -> vector<8x1xf32>
    %284 = vector.broadcast %283 : vector<8x1xf32> to vector<8x8xf32>
    %285 = arith.mulf %282, %284 : vector<8x8xf32>
    %286 = arith.truncf %285 : vector<8x8xf32> to vector<8x8xbf16>
    %287 = vector.extract_strided_slice %184 {offsets = [0, 24], sizes = [8, 8], strides = [1, 1]} : vector<8x32xbf16> to vector<8x8xbf16>
    %288 = vector.extract_strided_slice %187 {offsets = [0, 24], sizes = [8, 8], strides = [1, 1]} : vector<8x32xbf16> to vector<8x8xbf16>
    %289 = vector.extract_strided_slice %190 {offsets = [0, 24], sizes = [8, 8], strides = [1, 1]} : vector<8x32xbf16> to vector<8x8xbf16>
    %cst_111 = arith.constant -1.000000e+30 : f32
    %290 = vector.broadcast %cst_111 : f32 to vector<8x1xf32>
    %cst_112 = arith.constant 0.000000e+00 : f32
    %291 = vector.broadcast %cst_112 : f32 to vector<8x1xf32>
    %cst_113 = arith.constant 0.000000e+00 : f32
    %292 = vector.broadcast %cst_113 : f32 to vector<8x8xf32>
    %cst_114 = arith.constant dense<0.000000e+00> : vector<8x8xf32>
    %293 = tpu.matmul %287, %288, %cst_114 {dimension_numbers = #tpu.dot_dimension_numbers<[1], [1], [0], [0], [0, 0, 1, 0], [], []>} : vector<8x8xbf16>, vector<8x8xbf16>, vector<8x8xf32> -> vector<8x8xf32>
    %c0_115 = arith.constant 0 : index
    %c0_116 = arith.constant 0 : index
    %c0_117 = arith.constant 0 : index
    %294 = vector.load %arg4[%c0_115, %c0_116, %c0_117] : memref<1x8x8xbf16, #tpu.memory_space<vmem>>, vector<1x8x8xbf16>
    %295 = vector.shape_cast %294 : vector<1x8x8xbf16> to vector<8x8xbf16>
    %296 = arith.extf %295 : vector<8x8xbf16> to vector<8x8xf32>
    %297 = arith.addf %293, %296 : vector<8x8xf32>
    %cst_118 = arith.constant dense<0xFF800000> : vector<8xf32>
    %298 = vector.multi_reduction <maximumf>, %297, %cst_118 [1] : vector<8x8xf32> to vector<8xf32>
    %299 = vector.shape_cast %298 : vector<8xf32> to vector<8x1xf32>
    %300 = arith.maximumf %290, %299 : vector<8x1xf32>
    %301 = arith.subf %290, %300 : vector<8x1xf32>
    %302 = math.exp %301 : vector<8x1xf32>
    %303 = vector.broadcast %300 : vector<8x1xf32> to vector<8x8xf32>
    %304 = arith.subf %297, %303 : vector<8x8xf32>
    %305 = math.exp %304 : vector<8x8xf32>
    %306 = arith.mulf %302, %291 : vector<8x1xf32>
    %cst_119 = arith.constant dense<0.000000e+00> : vector<8xf32>
    %307 = vector.multi_reduction <add>, %305, %cst_119 [1] : vector<8x8xf32> to vector<8xf32>
    %308 = vector.shape_cast %307 : vector<8xf32> to vector<8x1xf32>
    %309 = arith.addf %306, %308 : vector<8x1xf32>
    %310 = vector.broadcast %302 : vector<8x1xf32> to vector<8x8xf32>
    %311 = arith.mulf %310, %292 : vector<8x8xf32>
    %312 = arith.truncf %305 : vector<8x8xf32> to vector<8x8xbf16>
    %cst_120 = arith.constant dense<0.000000e+00> : vector<8x8xf32>
    %313 = tpu.matmul %312, %289, %cst_120 {dimension_numbers = #tpu.dot_dimension_numbers<[1], [0], [0], [1], [0, 0, 1, 1], [], []>} : vector<8x8xbf16>, vector<8x8xbf16>, vector<8x8xf32> -> vector<8x8xf32>
    %314 = arith.addf %311, %313 : vector<8x8xf32>
    %315 = tpu.reciprocal %309 {approx = true} : vector<8x1xf32> -> vector<8x1xf32>
    %316 = vector.broadcast %315 : vector<8x1xf32> to vector<8x8xf32>
    %317 = arith.mulf %314, %316 : vector<8x8xf32>
    %318 = arith.truncf %317 : vector<8x8xf32> to vector<8x8xbf16>
    %319 = tpu.concatenate %222, %254, %286, %318 in 1 : vector<8x8xbf16>, vector<8x8xbf16>, vector<8x8xbf16>, vector<8x8xbf16> -> vector<8x32xbf16>
    %c0_121 = arith.constant 0 : index
    %c0_122 = arith.constant 0 : index
    %320 = vector.load %arg16[%c0_121, %c0_122] : memref<32x32xbf16, #tpu.memory_space<vmem>>, vector<32x32xbf16>
    %cst_123 = arith.constant dense<0.000000e+00> : vector<8x32xf32>
    %321 = tpu.matmul %319, %320, %cst_123 {dimension_numbers = #tpu.dot_dimension_numbers<[1], [0], [0], [1], [0, 0, 1, 1], [], []>} : vector<8x32xbf16>, vector<32x32xbf16>, vector<8x32xf32> -> vector<8x32xf32>
    %c0_124 = arith.constant 0 : index
    %c0_125 = arith.constant 0 : index
    %322 = vector.load %arg17[%c0_124, %c0_125] : memref<1x32xf32, #tpu.memory_space<vmem>>, vector<1x32xf32>
    %323 = vector.broadcast %322 : vector<1x32xf32> to vector<8x32xf32>
    %324 = arith.addf %321, %323 : vector<8x32xf32>
    %325 = arith.addf %324, %178 : vector<8x32xf32>
    %c0_126 = arith.constant 0 : index
    %c0_127 = arith.constant 0 : index
    %326 = vector.load %arg18[%c0_126, %c0_127] : memref<1x32xf32, #tpu.memory_space<vmem>>, vector<1x32xf32>
    %c0_128 = arith.constant 0 : index
    %c0_129 = arith.constant 0 : index
    %327 = vector.load %arg19[%c0_128, %c0_129] : memref<1x32xf32, #tpu.memory_space<vmem>>, vector<1x32xf32>
    %cst_130 = arith.constant dense<0.000000e+00> : vector<8xf32>
    %328 = vector.multi_reduction <add>, %325, %cst_130 [1] : vector<8x32xf32> to vector<8xf32>
    %329 = vector.shape_cast %328 : vector<8xf32> to vector<8x1xf32>
    %cst_131 = arith.constant 3.200000e+01 : f32
    %330 = vector.broadcast %cst_131 : f32 to vector<8x1xf32>
    %331 = arith.divf %329, %330 : vector<8x1xf32>
    %332 = vector.broadcast %331 : vector<8x1xf32> to vector<8x32xf32>
    %333 = arith.subf %325, %332 : vector<8x32xf32>
    %334 = arith.mulf %333, %333 : vector<8x32xf32>
    %cst_132 = arith.constant dense<0.000000e+00> : vector<8xf32>
    %335 = vector.multi_reduction <add>, %334, %cst_132 [1] : vector<8x32xf32> to vector<8xf32>
    %336 = vector.shape_cast %335 : vector<8xf32> to vector<8x1xf32>
    %cst_133 = arith.constant 3.200000e+01 : f32
    %337 = vector.broadcast %cst_133 : f32 to vector<8x1xf32>
    %338 = arith.divf %336, %337 : vector<8x1xf32>
    %339 = vector.broadcast %331 : vector<8x1xf32> to vector<8x32xf32>
    %340 = arith.subf %325, %339 : vector<8x32xf32>
    %cst_134 = arith.constant 9.99999974E-6 : f32
    %341 = vector.broadcast %cst_134 : f32 to vector<8x1xf32>
    %342 = arith.addf %338, %341 : vector<8x1xf32>
    %343 = math.rsqrt %342 : vector<8x1xf32>
    %344 = vector.broadcast %343 : vector<8x1xf32> to vector<8x32xf32>
    %345 = arith.mulf %340, %344 : vector<8x32xf32>
    %346 = vector.broadcast %326 : vector<1x32xf32> to vector<8x32xf32>
    %347 = arith.mulf %345, %346 : vector<8x32xf32>
    %348 = vector.broadcast %327 : vector<1x32xf32> to vector<8x32xf32>
    %349 = arith.addf %347, %348 : vector<8x32xf32>
    %350 = vector.broadcast %5 : vector<8x1xf32> to vector<8x32xf32>
    %351 = arith.mulf %349, %350 : vector<8x32xf32>
    %352 = arith.truncf %351 : vector<8x32xf32> to vector<8x32xbf16>
    %c0_135 = arith.constant 0 : index
    %c0_136 = arith.constant 0 : index
    %353 = vector.load %arg20[%c0_135, %c0_136] : memref<32x64xbf16, #tpu.memory_space<vmem>>, vector<32x64xbf16>
    %cst_137 = arith.constant dense<0.000000e+00> : vector<8x64xf32>
    %354 = tpu.matmul %352, %353, %cst_137 {dimension_numbers = #tpu.dot_dimension_numbers<[1], [0], [0], [1], [0, 0, 1, 1], [], []>} : vector<8x32xbf16>, vector<32x64xbf16>, vector<8x64xf32> -> vector<8x64xf32>
    %c0_138 = arith.constant 0 : index
    %c0_139 = arith.constant 0 : index
    %355 = vector.load %arg21[%c0_138, %c0_139] : memref<1x64xf32, #tpu.memory_space<vmem>>, vector<1x64xf32>
    %356 = vector.broadcast %355 : vector<1x64xf32> to vector<8x64xf32>
    %357 = arith.addf %354, %356 : vector<8x64xf32>
    %cst_140 = arith.constant 0.000000e+00 : f32
    %358 = vector.broadcast %cst_140 : f32 to vector<8x64xf32>
    %359 = arith.maximumf %357, %358 : vector<8x64xf32>
    %360 = arith.truncf %359 : vector<8x64xf32> to vector<8x64xbf16>
    %c0_141 = arith.constant 0 : index
    %c0_142 = arith.constant 0 : index
    %361 = vector.load %arg22[%c0_141, %c0_142] : memref<64x32xbf16, #tpu.memory_space<vmem>>, vector<64x32xbf16>
    %cst_143 = arith.constant dense<0.000000e+00> : vector<8x32xf32>
    %362 = tpu.matmul %360, %361, %cst_143 {dimension_numbers = #tpu.dot_dimension_numbers<[1], [0], [0], [1], [0, 0, 1, 1], [], []>} : vector<8x64xbf16>, vector<64x32xbf16>, vector<8x32xf32> -> vector<8x32xf32>
    %c0_144 = arith.constant 0 : index
    %c0_145 = arith.constant 0 : index
    %363 = vector.load %arg23[%c0_144, %c0_145] : memref<1x32xf32, #tpu.memory_space<vmem>>, vector<1x32xf32>
    %364 = vector.broadcast %363 : vector<1x32xf32> to vector<8x32xf32>
    %365 = arith.addf %362, %364 : vector<8x32xf32>
    %366 = arith.addf %365, %351 : vector<8x32xf32>
    %c0_146 = arith.constant 0 : index
    %c0_147 = arith.constant 0 : index
    %367 = vector.load %arg24[%c0_146, %c0_147] : memref<1x32xf32, #tpu.memory_space<vmem>>, vector<1x32xf32>
    %c0_148 = arith.constant 0 : index
    %c0_149 = arith.constant 0 : index
    %368 = vector.load %arg25[%c0_148, %c0_149] : memref<1x32xf32, #tpu.memory_space<vmem>>, vector<1x32xf32>
    %cst_150 = arith.constant dense<0.000000e+00> : vector<8xf32>
    %369 = vector.multi_reduction <add>, %366, %cst_150 [1] : vector<8x32xf32> to vector<8xf32>
    %370 = vector.shape_cast %369 : vector<8xf32> to vector<8x1xf32>
    %cst_151 = arith.constant 3.200000e+01 : f32
    %371 = vector.broadcast %cst_151 : f32 to vector<8x1xf32>
    %372 = arith.divf %370, %371 : vector<8x1xf32>
    %373 = vector.broadcast %372 : vector<8x1xf32> to vector<8x32xf32>
    %374 = arith.subf %366, %373 : vector<8x32xf32>
    %375 = arith.mulf %374, %374 : vector<8x32xf32>
    %cst_152 = arith.constant dense<0.000000e+00> : vector<8xf32>
    %376 = vector.multi_reduction <add>, %375, %cst_152 [1] : vector<8x32xf32> to vector<8xf32>
    %377 = vector.shape_cast %376 : vector<8xf32> to vector<8x1xf32>
    %cst_153 = arith.constant 3.200000e+01 : f32
    %378 = vector.broadcast %cst_153 : f32 to vector<8x1xf32>
    %379 = arith.divf %377, %378 : vector<8x1xf32>
    %380 = vector.broadcast %372 : vector<8x1xf32> to vector<8x32xf32>
    %381 = arith.subf %366, %380 : vector<8x32xf32>
    %cst_154 = arith.constant 9.99999974E-6 : f32
    %382 = vector.broadcast %cst_154 : f32 to vector<8x1xf32>
    %383 = arith.addf %379, %382 : vector<8x1xf32>
    %384 = math.rsqrt %383 : vector<8x1xf32>
    %385 = vector.broadcast %384 : vector<8x1xf32> to vector<8x32xf32>
    %386 = arith.mulf %381, %385 : vector<8x32xf32>
    %387 = vector.broadcast %367 : vector<1x32xf32> to vector<8x32xf32>
    %388 = arith.mulf %386, %387 : vector<8x32xf32>
    %389 = vector.broadcast %368 : vector<1x32xf32> to vector<8x32xf32>
    %390 = arith.addf %388, %389 : vector<8x32xf32>
    %391 = vector.broadcast %5 : vector<8x1xf32> to vector<8x32xf32>
    %392 = arith.mulf %390, %391 : vector<8x32xf32>
    %c0_155 = arith.constant 0 : index
    %c0_156 = arith.constant 0 : index
    %c0_157 = arith.constant 0 : index
    %393 = vector.load %arg26[%c0_155, %c0_156, %c0_157] : memref<1x8x32xf32, #tpu.memory_space<vmem>>, vector<1x8x32xf32>
    %394 = vector.shape_cast %393 : vector<1x8x32xf32> to vector<8x32xf32>
    %395 = vector.shape_cast %392 : vector<8x32xf32> to vector<1x8x32xf32>
    tpu.vector_store %arg26[%c0_155, %c0_156, %c0_157], %395 {strides = array<i32>} : memref<1x8x32xf32, #tpu.memory_space<vmem>>, vector<1x8x32xf32>,
    return
  }
  func.func @transform_0(%arg0: i32) -> (i32, i32, i32) {
    %c0_i32 = arith.constant 0 : i32
    %c0_i32_0 = arith.constant 0 : i32
    %c0_i32_1 = arith.constant 0 : i32
    return %arg0, %c0_i32, %c0_i32_0 : i32, i32, i32
  }
  func.func @transform_1(%arg0: i32) -> (i32, i32, i32) {
    %c0_i32 = arith.constant 0 : i32
    %c0_i32_0 = arith.constant 0 : i32
    %c0_i32_1 = arith.constant 0 : i32
    return %arg0, %c0_i32, %c0_i32_0 : i32, i32, i32
  }
  func.func @transform_2(%arg0: i32) -> (i32, i32, i32) {
    %c0_i32 = arith.constant 0 : i32
    %c0_i32_0 = arith.constant 0 : i32
    %c0_i32_1 = arith.constant 0 : i32
    return %arg0, %c0_i32, %c0_i32_0 : i32, i32, i32
  }
  func.func @transform_3(%arg0: i32) -> (i32, i32, i32) {
    %c0_i32 = arith.constant 0 : i32
    %c0_i32_0 = arith.constant 0 : i32
    %c0_i32_1 = arith.constant 0 : i32
    return %arg0, %c0_i32, %c0_i32_0 : i32, i32, i32
  }
  func.func @transform_4(%arg0: i32) -> (i32, i32, i32) {
    %c0_i32 = arith.constant 0 : i32
    %c0_i32_0 = arith.constant 0 : i32
    %c0_i32_1 = arith.constant 0 : i32
    return %arg0, %c0_i32, %c0_i32_0 : i32, i32, i32
  }
  func.func @transform_5(%arg0: i32) -> (i32, i32) {
    %c0_i32 = arith.constant 0 : i32
    %c0_i32_0 = arith.constant 0 : i32
    %c0_i32_1 = arith.constant 0 : i32
    return %c0_i32, %c0_i32_0 : i32, i32
  }
  func.func @transform_6(%arg0: i32) -> (i32, i32) {
    %c0_i32 = arith.constant 0 : i32
    %c0_i32_0 = arith.constant 0 : i32
    %c0_i32_1 = arith.constant 0 : i32
    return %c0_i32, %c0_i32_0 : i32, i32
  }
  func.func @transform_7(%arg0: i32) -> (i32, i32) {
    %c0_i32 = arith.constant 0 : i32
    %c0_i32_0 = arith.constant 0 : i32
    %c0_i32_1 = arith.constant 0 : i32
    return %c0_i32, %c0_i32_0 : i32, i32
  }
  func.func @transform_8(%arg0: i32) -> (i32, i32) {
    %c0_i32 = arith.constant 0 : i32
    %c0_i32_0 = arith.constant 0 : i32
    %c0_i32_1 = arith.constant 0 : i32
    return %c0_i32, %c0_i32_0 : i32, i32
  }
  func.func @transform_9(%arg0: i32) -> (i32, i32) {
    %c0_i32 = arith.constant 0 : i32
    %c0_i32_0 = arith.constant 0 : i32
    %c0_i32_1 = arith.constant 0 : i32
    return %c0_i32, %c0_i32_0 : i32, i32
  }
  func.func @transform_10(%arg0: i32) -> (i32, i32) {
    %c0_i32 = arith.constant 0 : i32
    %c0_i32_0 = arith.constant 0 : i32
    %c0_i32_1 = arith.constant 0 : i32
    return %c0_i32, %c0_i32_0 : i32, i32
  }
  func.func @transform_11(%arg0: i32) -> (i32, i32) {
    %c0_i32 = arith.constant 0 : i32
    %c0_i32_0 = arith.constant 0 : i32
    %c0_i32_1 = arith.constant 0 : i32
    return %c0_i32, %c0_i32_0 : i32, i32
  }
  func.func @transform_12(%arg0: i32) -> (i32, i32) {
    %c0_i32 = arith.constant 0 : i32
    %c0_i32_0 = arith.constant 0 : i32
    %c0_i32_1 = arith.constant 0 : i32
    return %c0_i32, %c0_i32_0 : i32, i32
  }
  func.func @transform_13(%arg0: i32) -> (i32, i32) {
    %c0_i32 = arith.constant 0 : i32
    %c0_i32_0 = arith.constant 0 : i32
    %c0_i32_1 = arith.constant 0 : i32
    return %c0_i32, %c0_i32_0 : i32, i32
  }
  func.func @transform_14(%arg0: i32) -> (i32, i32) {
    %c0_i32 = arith.constant 0 : i32
    %c0_i32_0 = arith.constant 0 : i32
    %c0_i32_1 = arith.constant 0 : i32
    return %c0_i32, %c0_i32_0 : i32, i32
  }
  func.func @transform_15(%arg0: i32) -> (i32, i32) {
    %c0_i32 = arith.constant 0 : i32
    %c0_i32_0 = arith.constant 0 : i32
    %c0_i32_1 = arith.constant 0 : i32
    return %c0_i32, %c0_i32_0 : i32, i32
  }
  func.func @transform_16(%arg0: i32) -> (i32, i32) {
    %c0_i32 = arith.constant 0 : i32
    %c0_i32_0 = arith.constant 0 : i32
    %c0_i32_1 = arith.constant 0 : i32
    return %c0_i32, %c0_i32_0 : i32, i32
  }
  func.func @transform_17(%arg0: i32) -> (i32, i32) {
    %c0_i32 = arith.constant 0 : i32
    %c0_i32_0 = arith.constant 0 : i32
    %c0_i32_1 = arith.constant 0 : i32
    return %c0_i32, %c0_i32_0 : i32, i32
  }
  func.func @transform_18(%arg0: i32) -> (i32, i32) {
    %c0_i32 = arith.constant 0 : i32
    %c0_i32_0 = arith.constant 0 : i32
    %c0_i32_1 = arith.constant 0 : i32
    return %c0_i32, %c0_i32_0 : i32, i32
  }
  func.func @transform_19(%arg0: i32) -> (i32, i32) {
    %c0_i32 = arith.constant 0 : i32
    %c0_i32_0 = arith.constant 0 : i32
    %c0_i32_1 = arith.constant 0 : i32
    return %c0_i32, %c0_i32_0 : i32, i32
  }
  func.func @transform_20(%arg0: i32) -> (i32, i32) {
    %c0_i32 = arith.constant 0 : i32
    %c0_i32_0 = arith.constant 0 : i32
    %c0_i32_1 = arith.constant 0 : i32
    return %c0_i32, %c0_i32_0 : i32, i32
  }
  func.func @transform_21(%arg0: i32) -> (i32, i32) {
    %c0_i32 = arith.constant 0 : i32
    %c0_i32_0 = arith.constant 0 : i32
    %c0_i32_1 = arith.constant 0 : i32
    return %c0_i32, %c0_i32_0 : i32, i32
  }
  func.func @transform_22(%arg0: i32) -> (i32, i32) {
    %c0_i32 = arith.constant 0 : i32
    %c0_i32_0 = arith.constant 0 : i32
    %c0_i32_1 = arith.constant 0 : i32
    return %c0_i32, %c0_i32_0 : i32, i32
  }
  func.func @transform_23(%arg0: i32) -> (i32, i32) {
    %c0_i32 = arith.constant 0 : i32
    %c0_i32_0 = arith.constant 0 : i32
    %c0_i32_1 = arith.constant 0 : i32
    return %c0_i32, %c0_i32_0 : i32, i32
  }
  func.func @transform_24(%arg0: i32) -> (i32, i32) {
    %c0_i32 = arith.constant 0 : i32
    %c0_i32_0 = arith.constant 0 : i32
    %c0_i32_1 = arith.constant 0 : i32
    return %c0_i32, %c0_i32_0 : i32, i32
  }
  func.func @transform_25(%arg0: i32) -> (i32, i32, i32) {
    %c0_i32 = arith.constant 0 : i32
    %c0_i32_0 = arith.constant 0 : i32
    %c0_i32_1 = arith.constant 0 : i32
    return %arg0, %c0_i32, %c0_i32_0 : i32, i32, i32
  }
}

</mosaic_0001>

<bundles_post_ra>
// kernel: tpu_custom_call.1
= control target key start
LH: loop header
LB: loop body
LE: loop exit
PB: predicated region body
PF: predicated region fallthrough
CT: control target
= control target key end

     0   :  { %s3726_s0 = inlined_call_operand.hbm [shape: bf16[2,8,32], index: 0, kind: input, shape index: {}]   ;;  %s3727_s1 = inlined_call_operand.hbm [shape: bf16[2,8,32], index: 1, kind: input, shape index: {}]   ;;  %s3728_s2 = inlined_call_operand.hbm [shape: bf16[2,8,8], index: 2, kind: input, shape index: {}]   ;;  %s3729_s3 = inlined_call_operand.hbm [shape: bf16[2,8,8], index: 3, kind: input, shape index: {}]   ;;  %s3730_s4 = inlined_call_operand.vmem [shape: f32[2,8,1], index: 4, kind: input, shape index: {}]   ;;  %s3731_s5 = inlined_call_operand.vmem [shape: bf16[32,32], index: 5, kind: input, shape index: {}]   ;;  %s3732_s6 = inlined_call_operand.vmem [shape: bf16[32,32], index: 6, kind: input, shape index: {}]   ;;  %s3733_s7 = inlined_call_operand.vmem [shape: bf16[32,32], index: 7, kind: input, shape index: {}]   ;;  %s3734_s8 = inlined_call_operand.vmem [shape: bf16[32,32], index: 8, kind: input, shape index: {}]   ;;  %s3735_s9 = inlined_call_operand.hbm [shape: f32[1,32], index: 9, kind: input, shape index: {}]   ;;  %s3736_s10 = inlined_call_operand.hbm [shape: f32[1,32], index: 10, kind: input, shape index: {}]   ;;  %s3737_s11 = inlined_call_operand.hbm [shape: f32[1,32], index: 11, kind: input, shape index: {}]   ;;  %s3738_s12 = inlined_call_operand.hbm [shape: bf16[32,32], index: 12, kind: input, shape index: {}]   ;;  %s3739_s13 = inlined_call_operand.hbm [shape: bf16[32,32], index: 13, kind: input, shape index: {}]   ;;  %s3740_s14 = inlined_call_operand.hbm [shape: bf16[32,32], index: 14, kind: input, shape index: {}]   ;;  %s3741_s15 = inlined_call_operand.vmem [shape: bf16[32,32], index: 15, kind: input, shape index: {}]   ;;  %s3742_s16 = inlined_call_operand.vmem [shape: f32[1,32], index: 16, kind: input, shape index: {}]   ;;  %s3743_s17 = inlined_call_operand.vmem [shape: f32[1,32], index: 17, kind: input, shape index: {}]   ;;  %s3744_s18 = inlined_call_operand.vmem [shape: f32[1,32], index: 18, kind: input, shape index: {}]   ;;  %s3745_s19 = inlined_call_operand.hbm [shape: bf16[32,64], index: 19, kind: input, shape index: {}]   ;;  %s3746_s20 = inlined_call_operand.vmem [shape: f32[1,64], index: 20, kind: input, shape index: {}]   ;;  %s3747_s21 = inlined_call_operand.vmem [shape: bf16[64,32], index: 21, kind: input, shape index: {}]   ;;  %s3748_s22 = inlined_call_operand.vmem [shape: f32[1,32], index: 22, kind: input, shape index: {}]   ;;  %s3749_s23 = inlined_call_operand.vmem [shape: f32[1,32], index: 23, kind: input, shape index: {}]   ;;  %s3750_s24 = inlined_call_operand.vmem [shape: f32[1,32], index: 24, kind: input, shape index: {}]   ;;  %s3751_s25 = inlined_call_operand.hbm [shape: f32[2,8,32], index: 25, kind: output, shape index: {}]  }
   0x1   :  { %3777 = sst [smem:[#allocation34_spill]] %s3726_s0 }
   0x2   :  { %3778 = sst [smem:[#allocation35_spill]] %s3727_s1 }
   0x3   :  { %3779 = sst [smem:[#allocation36_spill]] %s3728_s2 }
   0x4   :  { %3780 = sst [smem:[#allocation37_spill]] %s3729_s3 }
   0x5   :  { %3781 = sst [smem:[#allocation38_spill]] %s3730_s4 }
   0x6   :  { %3782 = sst [smem:[#allocation39_spill]] %s3731_s5 }
   0x7   :  { %3783 = sst [smem:[#allocation40_spill]] %s3732_s6 }
   0x8   :  { %3784 = sst [smem:[#allocation41_spill]] %s3733_s7 }
   0x9   :  { %3785 = sst [smem:[#allocation42_spill]] %s3734_s8 }
   0xa   :  { %3786 = sst [smem:[#allocation43_spill]] %s3735_s9 }
   0xb   :  { %3787 = sst [smem:[#allocation44_spill]] %s3736_s10 }
   0xc   :  { %3788 = sst [smem:[#allocation45_spill]] %s3737_s11 }
   0xd   :  { %3789 = sst [smem:[#allocation46_spill]] %s3738_s12 }
   0xe   :  { %3790 = sst [smem:[#allocation47_spill]] %s3739_s13 }
   0xf   :  { %3791 = sst [smem:[#allocation48_spill]] %s3740_s14 }
  0x10   :  { %3792 = sst [smem:[#allocation49_spill]] %s3744_s18 }
  0x11   :  { %3793 = sst [smem:[#allocation50_spill]] %s3746_s20 }
  0x12   :  { %3794 = sst [smem:[#allocation51_spill]] %s3748_s22 }
  0x13   :  { %3795 = sst [smem:[#allocation52_spill]] %s3749_s23 }
  0x14   :  { %3796 = sst [smem:[#allocation53_spill]] %s3750_s24 }
  0x15   :  { %3797 = sst [smem:[#allocation54_spill]] %s3751_s25 }
  0x16   :  { %30 = vsyncpa [#allocation3], 0 }
  0x17   :  { %32 = vsyncpa [#allocation3 + $0x1], 0 }
  0x18   :  { %33 = vsyncpa [#allocation6], 0 }
  0x19   :  { %35 = vsyncpa [#allocation6 + $0x1], 0 }
  0x1a   :  { %36 = vsyncpa [#allocation9], 0 }
  0x1b   :  { %38 = vsyncpa [#allocation9 + $0x1], 0 }
  0x1c   :  { %39 = vsyncpa [#allocation12], 0 }
  0x1d   :  { %40 = vsyncpa [#allocation15], 0 }
  0x1e   :  { %41 = vsyncpa [#allocation18], 0 }
  0x1f   :  { %42 = vsyncpa [#allocation4], 0 }
  0x20   :  { %44 = vsyncpa [#allocation4 + $0x1], 0  ;;  %s3248_s29 = smov 0   ;;  %s3250_s2 = smov 0  }
  0x21   :  { %s3252_s6 = smov 0   ;;  %s3254_s30 = smov 0  }
  0x22 LB: > { %3798 = sst [smem:[#allocation29_spill]] %s3087_s29  ;;  %s3272_s8 = sadd.s32 4294967295, %s3099_s30   ;;  %s3099_s30 = sphi %s3254_s30, %s3847_s30   ;;  %s3095_s6 = sphi %s3252_s6, %s3851_s6   ;;  %s3091_s2 = sphi %s3250_s2, %s3850_s2   ;;  %s3087_s29 = sphi %s3248_s29, %s3849_s29  }
  0x23   : > { %s3799_s26 = sld [smem:[#allocation43_spill]]  ;;  %p2298_p0 = scmp.ge.s32.totalorder %s3099_s30, 1 }
  0x24   : > { %p3772_p1 = scmp.eq.s32.totalorder %s3272_s8, 0  ;;  %p631_p2 = scmp.lt.s32.totalorder %s3099_s30, 3 }
  0x25   : > { %s3101_s4 = smov [#allocation10]   ;;  %s3801_s10 = sld [smem:[#allocation44_spill]] }
  0x26   : > { %p3277_p3 = pnand %p2298_p0, %p631_p2  ;;  %s657_s28 = sshll.u32 %s3101_s4, 4  ;;  %s658_s28 = int_to_ptr.vmem [resolvable:$true] %s657_s28 }
  0x27   : > { %s3102_s3 = smov [#allocation11]   ;;  %s3803_s12 = sld [smem:[#allocation46_spill]] }
  0x28   : > { %p2507_p5 = pneg %p3277_p3  ;;  %s3103_s9 = smov [#allocation14]  }
  0x29   : > { %s655_s1 = sshll.u32 %s3799_s26, 4  ;;  %s669_s26 = sshll.u32 %s3102_s3, 4  ;;  %s656_s1 = int_to_ptr.hbm [resolvable:$true] %s655_s1  ;;  %s670_s26 = int_to_ptr.vmem [resolvable:$true] %s669_s26 }
  0x2a   : > { %p3289_p6 = pnand %p2507_p5, %p3772_p1  ;;  %s692_s5 = sshll.u32 %s3103_s9, 4  ;;  %s693_s5 = int_to_ptr.vmem [resolvable:$true] %s692_s5 }
  0x2b   : > { %s667_s0 = sshll.u32 %s3801_s10, 4  ;;  %s3804_s14 = sld [smem:[#allocation48_spill]]  ;;  %s668_s0 = int_to_ptr.hbm [resolvable:$true] %s667_s0 }
  0x2c   : > { %2510 = dma.hbm_to_vmem [thread:$0]  (!%p3289_p6), %s656_s1, 16, %s658_s28, [#allocation9]  }
  0x2d   : > { %s690_s24 = sshll.u32 %s3803_s12, 4  ;;  %s3761_s4 = smov 64   ;;  %s691_s24 = int_to_ptr.hbm [resolvable:$true] %s690_s24 }
  0x2e   : > { %2513 = dma.hbm_to_vmem [thread:$0]  (!%p3289_p6), %s668_s0, 16, %s670_s26, [#allocation12]  }
  0x2f   : > { %s3763_s12 = smov 4   ;;  %s3106_s1 = smov [#allocation17]  }
  0x30   : > { %2519 = dma.hbm_to_vmem [thread:$0]  (!%p3289_p6), %s691_s24, 256, %s693_s5, [#allocation15], %s3761_s4, %s3761_s4, %s3763_s12  }
  0x31   : > { %s718_s25 = sshll.u32 %s3804_s14, 4  ;;  %s720_s28 = sshll.u32 %s3106_s1, 4  ;;  %s719_s25 = int_to_ptr.hbm [resolvable:$true] %s718_s25  ;;  %s721_s28 = int_to_ptr.vmem [resolvable:$true] %s720_s28 }
  0x32   : > { %2525 = dma.hbm_to_vmem [thread:$0]  (!%p3289_p6), %s719_s25, 256, %s721_s28, [#allocation18], %s3761_s4, %s3761_s4, %s3763_s12  }
  0x33   : > { %s2297_s10 = sadd.s32 4294967294, %s3099_s30   ;;  %s3315_s0 = sadd.s32 1, %s3099_s30  }
  0x34   : > { %3805 = sst [smem:[#allocation30_spill]] %s3315_s0  ;;  %s54_s26 = ssub.s32 %s3099_s30, %s3315_s0 }
  0x35   : > { %s57_s24 = sadd.s32 1, %s3095_s6  ;;  %p55_p7 = scmp.eq.s32.totalorder %s54_s26, 0 }
  0x36   : > { %p64_p8 = scmp.ne.s32.totalorder %s3095_s6, %s3091_s2  ;;  %p65_p9 = scmp.eq.s32.totalorder %s3099_s30, 0 }
  0x37   : > { %p70_p10 = scmp.ne.s32.totalorder %s3091_s2, %s3087_s29  ;;  %p618_p13 = scmp.eq.s32.totalorder %s3272_s8, 1 }
  0x38   : > { %s3326_s9 = scalar_select %p55_p7, %s3095_s6, %s57_s24  }
  0x39   : > { %p66_p11 = por %p65_p9, %p64_p8  ;;  %p3330_p12 = por %p3772_p1, %p70_p10 }
  0x3a   : > { %3806 = sst [smem:[#allocation31_spill]] %s3326_s9  ;;  %p624_p0 = scmp.eq.s32.totalorder %s2297_s10, 1 }
  0x3b   : > { %p2553_p2 = scmp.lt.s32.totalorder %s3099_s30, 2  ;;  %s3769_s3 = sand.u32 1, %s3095_s6  }
  0x3c   : > { %p3337_p5 = por %p618_p13, %p64_p8  ;;  %p3341_p4 = por %p624_p0, %p70_p10 }
  0x3d   : > { %s3347_s28 = sshll.u32 %s3769_s3, 2  ;;  %s3350_s26 = sshll.u32 %s3099_s30, 2 }
  0x3e   : > { %s3808_s25 = scalar_select %p3337_p5, 1, 0 }
  0x3f   : > { %s3810_s1 = scalar_select %p3341_p4, 1, 0 }
  0x40   : > { %3809 = sst [smem:[#allocation32_spill]] %s3808_s25  ;;  %p3352_p7 = pnand %p2553_p2, %p66_p11 }
  0x41   : > { %3811 = sst [smem:[#allocation33_spill]] %s3810_s1  ;;  %s3773_s10 = sand.u32 1, %s3099_s30  }
  0x42   : > { %s3813_s14 = sld [smem:[#allocation35_spill]]  ;;  %s798_s1 = scalar_lea.vmem [#allocation5], %s3347_s28 }
  0x43   : > { %s806_s29 = sshll.u32 %s798_s1, 4  ;;  %s3364_s3 = scalar_lea.sflag [#allocation6], %s3773_s10  ;;  %s807_s29 = int_to_ptr.vmem [resolvable:$true] %s806_s29 }
  0x44   : > { %p2803_p9 = pneg %p3352_p7 }
  0x48   : > { %s802_s9 = scalar_lea.hbm %s3813_s14, %s3350_s26 }
  0x49   : > { %s804_s0 = sshll.u32 %s802_s9, 4  ;;  %s2806_s9 = scalar_lea.hbm %s3813_s14, 8  ;;  %s805_s0 = int_to_ptr.hbm [resolvable:$true] %s804_s0 }
  0x4a   : > { %s2799_s25 = sshra.s32 %s805_s0, 4  ;;  %s2800_s25 = int_to_ptr.hbm [resolvable:$true] %s2799_s25 }
  0x4b   : > { %s2801_s23 = scalar_lea.hbm %s2800_s25, 4  ;;  %p2807_p13 = scmp.lt.s32.totalorder %s2800_s25, %s3813_s14 }
  0x4c   : > { %p2802_p8 = scmp.ne.s32.totalorder %s2800_s25, %s2801_s23  ;;  %p2808_p0 = scmp.lt.s32.totalorder %s2806_s9, %s2801_s23 }
  0x4e   : > { %p2804_p10 = pnand %p2803_p9, %p2802_p8  ;;  %p2809_p2 = por %p2808_p0, %p2807_p13 }
  0x50   : > { %p2805_p11 = pneg %p2804_p10 }
  0x52   : > { %p2810_p1 = pnand %p2809_p2, %p2805_p11 }
  0x54   : > { %2813 = shalt.err (!%p2810_p1)
}
  0x55   : > { %2535 = dma.hbm_to_vmem [thread:$0]  (!%p3352_p7), %s805_s0, 64, %s807_s29, %s3364_s3  }
  0x56   : > { %s3814_s11 = sld [smem:[#allocation45_spill]]  ;;  %s3107_s12 = smov [#allocation13]  }
  0x57   : > { %s681_s22 = sshll.u32 %s3107_s12, 4  ;;  %s3815_s13 = sld [smem:[#allocation47_spill]]  ;;  %s682_s22 = int_to_ptr.vmem [resolvable:$true] %s681_s22 }
  0x58   : > { %s744_s0 = sshll.u32 %s3745_s19, 4  ;;  %s3108_s20 = smov [#allocation16]   ;;  %s745_s0 = int_to_ptr.hbm [resolvable:$true] %s744_s0 }
  0x59   : > { %s706_s10 = sshll.u32 %s3108_s20, 4  ;;  %s3816_s1 = smov 4   ;;  %s707_s10 = int_to_ptr.vmem [resolvable:$true] %s706_s10 }
  0x5a   : > { %s3817_s12 = smov 64   ;;  %s3109_s25 = smov [#allocation19]  }
  0x5b   : > { %s746_s23 = sshll.u32 %s3109_s25, 4  ;;  %s3818_s9 = sld [smem:[#allocation34_spill]]  ;;  %s747_s23 = int_to_ptr.vmem [resolvable:$true] %s746_s23 }
  0x5c   : > { %s679_s18 = sshll.u32 %s3814_s11, 4  ;;  %s779_s20 = scalar_lea.vmem [#allocation2], %s3347_s28  ;;  %s680_s18 = int_to_ptr.hbm [resolvable:$true] %s679_s18 }
  0x5d   : > { %s704_s4 = sshll.u32 %s3815_s13, 4  ;;  %s787_s11 = sshll.u32 %s779_s20, 4  ;;  %s705_s4 = int_to_ptr.hbm [resolvable:$true] %s704_s4  ;;  %s788_s11 = int_to_ptr.vmem [resolvable:$true] %s787_s11 }
  0x5e   : > { %2516 = dma.hbm_to_vmem [thread:$0]  (!%p3289_p6), %s680_s18, 16, %s682_s22, [#allocation12]  }
  0x5f   : > { %2522 = dma.hbm_to_vmem [thread:$0]  (!%p3289_p6), %s705_s4, 256, %s707_s10, [#allocation15], %s3817_s12, %s3817_s12, %s3816_s1  }
  0x60   : > { %2528 = dma.hbm_to_vmem [thread:$0]  (!%p3289_p6), %s745_s0, 256, %s747_s23, [#allocation18], %s3817_s12, %s3817_s12, %s3816_s1  }
  0x61   : > { %s783_s29 = scalar_lea.hbm %s3818_s9, %s3350_s26  ;;  %s3819_s14 = sand.u32 1, %s3095_s6  }
  0x62   : > { %s785_s13 = sshll.u32 %s783_s29, 4  ;;  %s776_s4 = scalar_lea.sflag [#allocation3], %s3819_s14  ;;  %s786_s13 = int_to_ptr.hbm [resolvable:$true] %s785_s13 }
  0x63   : > { %s2919_s10 = sshra.s32 %s786_s13, 4  ;;  %s2926_s1 = scalar_lea.hbm %s3818_s9, 8  ;;  %s2920_s10 = int_to_ptr.hbm [resolvable:$true] %s2919_s10 }
  0x64   : > { %s2921_s25 = scalar_lea.hbm %s2920_s10, 4  ;;  %p2927_p6 = scmp.lt.s32.totalorder %s2920_s10, %s3818_s9 }
  0x65   : > { %p2922_p1 = scmp.ne.s32.totalorder %s2920_s10, %s2921_s25  ;;  %p2928_p11 = scmp.lt.s32.totalorder %s2926_s1, %s2921_s25 }
  0x67   : > { %p2924_p8 = pnand %p2922_p1, %p2803_p9  ;;  %p2929_p13 = por %p2928_p11, %p2927_p6 }
  0x69   : > { %p2925_p10 = pneg %p2924_p8 }
  0x6b   : > { %p2930_p0 = pnand %p2929_p13, %p2925_p10 }
  0x6d   : > { %2933 = shalt.err (!%p2930_p0)
}
  0x6e   : > { %2532 = dma.hbm_to_vmem [thread:$0]  (!%p3352_p7), %s786_s13, 64, %s788_s11, %s776_s4  }
  0x6f   : > { %s3820_s22 = sld [smem:[#allocation36_spill]]  ;;  %s817_s20 = scalar_lea.vmem [#allocation7], %s3347_s28 }
  0x70   : > { %s825_s7 = sshll.u32 %s817_s20, 4  ;;  %s826_s7 = int_to_ptr.vmem [resolvable:$true] %s825_s7 }
  0x75   : > { %s821_s29 = scalar_lea.hbm %s3820_s22, %s3350_s26  ;;  %s2956_s11 = scalar_lea.hbm %s3820_s22, 8 }
  0x76   : > { %s823_s0 = sshll.u32 %s821_s29, 4  ;;  %s824_s0 = int_to_ptr.hbm [resolvable:$true] %s823_s0 }
  0x77   : > { %s2949_s10 = sshra.s32 %s824_s0, 4  ;;  %s2950_s10 = int_to_ptr.hbm [resolvable:$true] %s2949_s10 }
  0x78   : > { %s2951_s25 = scalar_lea.hbm %s2950_s10, 4  ;;  %p2957_p10 = scmp.lt.s32.totalorder %s2950_s10, %s3820_s22 }
  0x79   : > { %p2952_p2 = scmp.ne.s32.totalorder %s2950_s10, %s2951_s25  ;;  %p2958_p6 = scmp.lt.s32.totalorder %s2956_s11, %s2951_s25 }
  0x7b   : > { %p2954_p1 = pnand %p2952_p2, %p2803_p9  ;;  %p2959_p11 = por %p2958_p6, %p2957_p10 }
  0x7d   : > { %p2955_p8 = pneg %p2954_p1 }
  0x7f   : > { %p2960_p13 = pnand %p2959_p11, %p2955_p8 }
  0x81   : > { %2963 = shalt.err (!%p2960_p13)
}
  0x82   : > { %2538 = dma.hbm_to_vmem [thread:$0]  (!%p3352_p7), %s824_s0, 64, %s826_s7, %s3364_s3  }
  0x83   : > { %s3821_s18 = sld [smem:[#allocation37_spill]]  ;;  %s836_s20 = scalar_lea.vmem [#allocation8], %s3347_s28 }
  0x84   : > { %s844_s1 = sshll.u32 %s836_s20, 4  ;;  %s3822_s10 = sand.u32 1, %s3099_s30   ;;  %s845_s1 = int_to_ptr.vmem [resolvable:$true] %s844_s1 }
  0x85   : > { %s833_s25 = scalar_lea.sflag [#allocation9], %s3822_s10 }
  0x89   : > { %s840_s29 = scalar_lea.hbm %s3821_s18, %s3350_s26  ;;  %s2986_s0 = scalar_lea.hbm %s3821_s18, 8 }
  0x8a   : > { %s842_s12 = sshll.u32 %s840_s29, 4  ;;  %s843_s12 = int_to_ptr.hbm [resolvable:$true] %s842_s12 }
  0x8b   : > { %s2979_s11 = sshra.s32 %s843_s12, 4  ;;  %s2980_s11 = int_to_ptr.hbm [resolvable:$true] %s2979_s11 }
  0x8c   : > { %s2981_s13 = scalar_lea.hbm %s2980_s11, 4  ;;  %p2987_p8 = scmp.lt.s32.totalorder %s2980_s11, %s3821_s18 }
  0x8d   : > { %p2982_p0 = scmp.ne.s32.totalorder %s2980_s11, %s2981_s13  ;;  %p2988_p10 = scmp.lt.s32.totalorder %s2986_s0, %s2981_s13 }
  0x8f   : > { %p2984_p2 = pnand %p2982_p0, %p2803_p9  ;;  %p2989_p6 = por %p2988_p10, %p2987_p8 }
  0x91   : > { %p2985_p1 = pneg %p2984_p2 }
  0x93   : > { %p2990_p11 = pnand %p2989_p6, %p2985_p1 }
  0x95   : > { %2993 = shalt.err (!%p2990_p11)
}
  0x96   : > { %2541 = dma.hbm_to_vmem [thread:$0]  (!%p3352_p7), %s843_s12, 64, %s845_s1, %s833_s25  }
  0x97   : > { %860 = sbr.rel (%p3277_p3) target bundleno = 3097 (0xc19), region = 120  ;;  %s3457_s4 = sand.u32 (!%p3277_p3), 1, %s3091_s2  }
  0x98   : > { %s3460_s23 = sshll.u32 (!%p3277_p3), %s3457_s4, 2  ;;  %s863_s14 = scalar_lea.sflag (!%p3277_p3), [#allocation3], %s3457_s4 }
  0x99   : > { %s866_s29 = scalar_lea.vmem (!%p3277_p3), [#allocation2], %s3460_s23 }
  0x9c   : > { %3054 = dma.done.wait (%p3330_p12), %s863_s14, 64  }
  0x9d   : > { %3056 = vsyncadd (%p3330_p12), %s863_s14, 4294967232  ;;  %s872_s27 = sand.u32 1, %s3272_s8   ;;  %s876_s20 = scalar_lea.vmem [#allocation5], %s3460_s23 }
  0x9e   : > { %s873_s24 = scalar_lea.sflag [#allocation6], %s872_s27 }
  0x9f   : > { %3058 = dma.done.wait (%p3330_p12), %s873_s24, 128  }
  0xa0   : > { %3060 = vsyncadd (%p3330_p12), %s873_s24, 4294967168  ;;  %s886_s1 = scalar_lea.vmem [#allocation7], %s3460_s23  ;;  %s893_s12 = scalar_lea.sflag [#allocation9], %s872_s27 }
  0xa1   : > { %s896_s10 = scalar_lea.vmem [#allocation8], %s3460_s23 }
  0xa2   : > { %3062 = dma.done.wait (%p3330_p12), %s893_s12, 64  }
  0xa3   : > { %3064 = vsyncadd (%p3330_p12), %s893_s12, 4294967232  ;;  %p3823_p3 = scmp.eq.s32.totalorder %s3272_s8, 0 }
  0xa5   : > { %3066 = dma.done.wait (%p3823_p3), [#allocation9], 16   ;;  %p3824_p7 = pmov %p3823_p3 }
  0xa6   : > { %p3825_p9 = pmov %p3823_p3 }
  0xa7   : > { %3068 = vsyncadd (%p3824_p7), [#allocation9], 4294967280 }
  0xa8   : > { %3070 = dma.done.wait (%p3825_p9), [#allocation12], 32   ;;  %p3826_p13 = pmov %p3823_p3 }
  0xa9   : > { %p3827_p0 = pmov %p3823_p3 }
  0xaa   : > { %3072 = vsyncadd (%p3826_p13), [#allocation12], 4294967264 }
  0xab   : > { %3074 = dma.done.wait (%p3827_p0), [#allocation15], 512   ;;  %p3828_p2 = pmov %p3827_p0 }
  0xac   : > { %p3829_p12 = pmov %p3827_p0 }
  0xad   : > { %3076 = vsyncadd (%p3828_p2), [#allocation15], 4294966784 }
  0xae   : > { %3078 = dma.done.wait (%p3829_p12), [#allocation18], 512   ;;  %p3830_p1 = pmov %p3827_p0 }
  0xaf   : > { %s3831_s11 = sld [smem:[#allocation39_spill]]  ;;  %v3508_v4 = vld [vmem:[%s866_s29] sm:$0xf]  ;;  %vm1043_vm0 = vcmask 261120   ;;  %vm1124_vm1 = vcmask 64512   ;;  %s3110_s29 = smov 112  }
  0xb0   : > { %3080 = vsyncadd (%p3830_p1), [#allocation18], 4294966784  ;;  %s3832_s7 = sld [smem:[#allocation40_spill]]  ;;  %s3111_s13 = smov 120   ;;  %vm1163_vm2 = vcmask 1043456   ;;  %vm1403_vm3 = vcmask 130048  }
  0xb1   : > { %s3833_s12 = sld [smem:[#allocation41_spill]]  ;;  %s3112_s3 = smov 104   ;;  %v1122_v33 = vld [vmem:[%s886_s1] sm:$0xf]  ;;  %vm1406_vm4 = vcmask 195584   ;;  %vm2015_vm12 = vcmask 523264  }
  0xb2   : > { %v1123_v34 = vunpack.c.l.bf16 %v1122_v33  ;;  %s3113_s1 = smov 8   ;;  %s3114_s0 = smov 16  }
  0xb3   : > { %s3775_s26 = smov 24   ;;  %s3834_s27 = sld [smem:[#allocation42_spill]] }
  0xb4   : > { %p1018_p8 = scmp.lt.s32.totalorder %s3272_s8, 1  ;;  %s3835_s5 = sld [smem:[#allocation38_spill]] }
  0xb5   : > { %v2448_v0 = vld [vmem:[%s3831_s11 + $0x8] sm:$0xff]  ;;  %v2447_v2 = vld [vmem:[%s3831_s11] sm:$0xff]  ;;  %s3836_s23 = smov 24   ;;  %s3839_s14 = sld [smem:[#allocation51_spill]] }
  0xb6   : > { %v2450_v1 = vld [vmem:[%s3832_s7 + $0x8] sm:$0xff]  ;;  %v2449_v3 = vld [vmem:[%s3832_s7] sm:$0xff]  ;;  %1053 = vmatpush.bf16.msra.mxu0 %v2448_v0  ;;  %s1019_s25 = scalar_select %p1018_p8, %s3272_s8, 1 }
  0xb7   : > { %1084 = vmatpush.bf16.msra.mxu1 %v2450_v1  ;;  %v2452_v5 = vld [vmem:[%s3833_s12 + $0x8] sm:$0xff]  ;;  %v2451_v6 = vld [vmem:[%s3833_s12] sm:$0xff]  ;;  %s2327_s24 = sshll.u32 %s3457_s4, 3 }
  0xb8   : > { %1114 = vmatpush.bf16.msra.mxu2 %v2452_v5  ;;  %s2328_s28 = sshll.u32 %s1019_s25, 3 }
  0xba   : > { %1054 = vmatpush.bf16.msra.mxu0 %v2447_v2 }
  0xbb   : > { %1085 = vmatpush.bf16.msra.mxu1 %v2449_v3 }
  0xbc   : > { %1115 = vmatpush.bf16.msra.mxu2 %v2451_v6 }
  0xbd   : > { %2337 = vmatmul.msk.bf16.vlgmr.msra.gmra.mxu0 %vm1043_vm0, %v3508_v4 }
  0xbe   : > { %2346 = vmatmul.msk.bf16.vlgmr.msra.gmra.mxu1 %vm1043_vm0, %v3508_v4 }
  0xbf   : > { %2355 = vmatmul.msk.bf16.vlgmr.msra.gmra.mxu2 %vm1043_vm0, %v3508_v4 }
 0x13a   : > { %v1056_v7 = vpop.f32.mrf.mxu0 }
 0x13b   : > { %v1087_v8 = vpop.f32.mrf.mxu1  ;;  %v1060_v9 = vmul.f32 0.35355338, %v1056_v7 }
 0x13c   : > { %v1091_v10 = vpack.c.bf16 %v1087_v8, %v1087_v8 }
 0x13d   : > { %v1061_v11 = vpack.c.bf16 %v1060_v9, %v1060_v9 }
 0x13e   : > { %v1190_v12 = vunpack.c.l.b16 %v1091_v10  ;;  %v1129_v13 = vsel %vm1124_vm1, %v1091_v10, 0 }
 0x13f   : > { %1138 = vmatpush.bf16.xpose.msra.mxu3 %v1129_v13  ;;  %v1185_v14 = vunpack.c.l.b16 %v1061_v11 }
 0x140   : > { %v1191_v15 = vpack.c.b16 %v1190_v12, %v1190_v12 }
 0x141   : > { %v1186_v16 = vpack.c.b16 %v1185_v14, %v1185_v14 }
 0x142   : > { %1259 = vrot.lane.b32.xlu1 %v1191_v15, %s3110_s29  ;;  %1192 = vrot.lane.b32.xlu0 %v1191_v15, %s3111_s13  ;;  %v1058_v17 = vpop.f32.mrf.mxu0  ;;  %v1117_v23 = vpop.f32.mrf.mxu2 }
 0x143   : > { %v1089_v18 = vpop.f32.mrf.mxu1  ;;  %1257 = vrot.lane.b32.xlu2 %v1186_v16, %s3110_s29  ;;  %v1121_v24 = vpack.c.bf16 %v1117_v23, %v1117_v23 }
 0x145   : > { %v1230_v26 = vunpack.c.l.b16 %v1121_v24  ;;  %v1165_v27 = vsel %vm1163_vm2, %v1121_v24, 0 }
 0x146   : > { %2356 = vmatmul.msk.bf16.vlgmr.msra.gmra.mxu3 %vm1124_vm1, %v1061_v11  ;;  %1174 = vmatpush.bf16.msrb.mxu0 %v1165_v27 }
 0x147   : > { %v1231_v31 = vpack.c.b16 %v1230_v26, %v1230_v26 }
 0x14a   : > { %1323 = vrot.lane.b32.xlu1 %v1191_v15, %s3112_s3  ;;  %1187 = vrot.lane.b32.xlu0 %v1186_v16, %s3111_s13  ;;  %v1119_v32 = vpop.f32.mrf.mxu2 }
 0x14b   : > { %1321 = vrot.lane.b32.xlu2 %v1186_v16, %s3112_s3 }
 0x153   : > { %1232 = vrot.lane.b32.xlu2 %v1231_v31, %s3111_s13 }
 0x19d   : > { %v1258_v25 = vpop.permute.xlu2 %1257 }
 0x1a5   : > { %v1322_v37 = vpop.permute.xlu2 %1321 }
 0x1ad   : > { %v1233_v51 = vpop.permute.xlu2 %1232 }
 0x1ae   : > { %v1238_v52 = vsel %vm1163_vm2, %v1233_v51, 0 }
 0x1af   : > { %1247 = vmatpush.bf16.msrb.mxu2 %v1238_v52 }
 0x1b4   : > { %v1260_v19 = vpop.permute.xlu1 %1259  ;;  %v1193_v20 = vpop.permute.xlu0 %1192 }
 0x1b5   : > { %v1198_v21 = vsel %vm1124_vm1, %v1193_v20, 0  ;;  %v1265_v22 = vsel %vm1124_vm1, %v1260_v19, 0 }
 0x1b6   : > { %1207 = vmatpush.bf16.xpose.msrb.mxu1 %v1198_v21  ;;  %1274 = vmatpush.bf16.xpose.msrb.mxu3 %v1265_v22 }
 0x1bc   : > { %v1324_v28 = vpop.permute.xlu1 %1323  ;;  %v1188_v29 = vpop.permute.xlu0 %1187 }
 0x1bd   : > { %v1329_v30 = vsel %vm1124_vm1, %v1324_v28, 0  ;;  %2358 = vmatmul.msk.bf16.vlgmr.msrb.gmra.mxu1 %vm1124_vm1, %v1188_v29  ;;  %2360 = vmatmul.msk.bf16.vlgmr.msrb.gmra.mxu3 %vm1124_vm1, %v1258_v25 }
 0x1be   : > { %1338 = vmatpush.bf16.xpose.msra.mxu1 %v1329_v30 }
 0x1c9   : > { %v1140_v35 = vpop.f32.mrf.mxu3 }
 0x1ca   : > { %v1141_v36 = vadd.f32 %v1140_v35, %v1123_v34 }
 0x1cc   : > { %v1144_v38 = vsel %vm1124_vm1, %v1141_v36, -inf }
 0x1cd   : > { %2362 = vmatmul.msk.bf16.vlgmr.msra.gmra.mxu1 %vm1124_vm1, %v1322_v37  ;;  %1145 = vmax.xlane.f32.xlu1 %v1144_v38 }
 0x1d1   : > { %v1142_v39 = vpop.f32.mrf.mxu3 }
 0x1e6   : > { %1360 = vrot.lane.b32.xlu1 %v1231_v31, %s3112_s3 }
 0x23a   : > { %v1209_v40 = vpop.f32.mrf.mxu1 }
 0x23b   : > { %v1210_v41 = vadd.f32 %v1209_v40, %v1123_v34 }
 0x23d   : > { %v1213_v42 = vsel %vm1124_vm1, %v1210_v41, -inf }
 0x23e   : > { %1214 = vmax.xlane.f32.xlu0 %v1213_v42 }
 0x240   : > { %v1276_v43 = vpop.f32.mrf.mxu3  ;;  %v1146_v44 = vpop.xlane.xlu1 %1145 }
 0x241   : > { %v1277_v45 = vadd.f32 %v1276_v43, %v1123_v34  ;;  %v1147_v46 = vmax.f32 %v1146_v44, -1e+30 }
 0x242   : > { %v1211_v47 = vpop.f32.mrf.mxu1 }
 0x243   : > { %v1151_v48 = vsub.f32 %v1141_v36, %v1147_v46  ;;  %v1280_v50 = vsel %vm1124_vm1, %v1277_v45, -inf  ;;  %v1148_v1 = vsub.f32 -1e+30, %v1147_v46 }
 0x245   : > { %v1152_v49 = vmul.f32 1.442695, %v1151_v48  ;;  %v1149_v5 = vmul.f32 1.442695, %v1148_v1 }
 0x246   : > { %1281 = vmax.xlane.f32.xlu0 %v1280_v50 }
 0x247   : > { %2623 = vpow2.f32 %v1152_v49 }
 0x248   : > { %v1278_v53 = vpop.f32.mrf.mxu3 }
 0x24a   : > { %v1340_v54 = vpop.f32.mrf.mxu1 }
 0x24b   : > { %v1341_v55 = vadd.f32 %v1340_v54, %v1123_v34 }
 0x24d   : > { %v1344_v56 = vsel %vm1124_vm1, %v1341_v55, -inf  ;;  %v2624_v57 = vpop.eup %2623 }
 0x24e   : > { %1345 = vmax.xlane.f32.xlu2 %v1344_v56  ;;  %v1155_v58 = vsel %vm1124_vm1, %v2624_v57, 0.0  ;;  %v1159_v59 = vpack.c.bf16 %v2624_v57, %v2624_v57 }
 0x24f   : > { %1156 = vadd.xlane.f32.xlu1 %v1155_v58 }
 0x250   : > { %2357 = vmatmul.msk.bf16.vlgmr.msrb.gmra.mxu0 %vm1124_vm1, %v1159_v59 }
 0x252   : > { %v1342_v60 = vpop.f32.mrf.mxu1 }
 0x258   : > { %v1361_v61 = vpop.permute.xlu1 %1360 }
 0x259   : > { %v1366_v62 = vsel %vm1163_vm2, %v1361_v61, 0 }
 0x25a   : > { %1375 = vmatpush.bf16.msra.mxu2 %v1366_v62 }
 0x266   : > { %1296 = vrot.lane.b32.xlu2 %v1231_v31, %s3110_s29 }
 0x2b1   : > { %v1215_v63 = vpop.xlane.xlu0 %1214 }
 0x2b2   : > { %v1216_v0 = vmax.f32 %v1215_v63, -1e+30 }
 0x2b4   : > { %v1220_v2 = vsub.f32 %v1210_v41, %v1216_v0  ;;  %v1217_v34 = vsub.f32 -1e+30, %v1216_v0 }
 0x2b6   : > { %v1221_v3 = vmul.f32 1.442695, %v1220_v2  ;;  %v1218_v35 = vmul.f32 1.442695, %v1217_v34 }
 0x2b8   : > { %2625 = vpow2.f32 %v1221_v3 }
 0x2b9   : > { %v1282_v6 = vpop.xlane.xlu0 %1281  ;;  %2627 = vpow2.f32 %v1149_v5 }
 0x2ba   : > { %v1283_v7 = vmax.f32 %v1282_v6, -1e+30 }
 0x2bc   : > { %v1287_v8 = vsub.f32 %v1277_v45, %v1283_v7  ;;  %v1284_v36 = vsub.f32 -1e+30, %v1283_v7 }
 0x2be   : > { %v1288_v9 = vmul.f32 1.442695, %v1287_v8  ;;  %v2626_v10 = vpop.eup %2625  ;;  %v1285_v37 = vmul.f32 1.442695, %v1284_v36 }
 0x2bf   : > { %v1224_v11 = vsel %vm1124_vm1, %v2626_v10, 0.0  ;;  %v1228_v12 = vpack.c.bf16 %v2626_v10, %v2626_v10  ;;  %v2628_v13 = vpop.eup %2627 }
 0x2c0   : > { %2629 = vpow2.f32 %v1288_v9  ;;  %1225 = vadd.xlane.f32.xlu0 %v1224_v11  ;;  %v1154_v18 = vmul.f32 0.0, %v2628_v13  ;;  %v2454_v13 = vld [vmem:[%s3834_s27 + $0x8] sm:$0xff] }
 0x2c1   : > { %v1346_v14 = vpop.xlane.xlu2 %1345  ;;  %2359 = vmatmul.msk.bf16.vlgmr.msrb.gmra.mxu2 %vm1124_vm1, %v1228_v12  ;;  %1437 = vmatpush.bf16.msra.mxu3 %v2454_v13 }
 0x2c2   : > { %v1347_v15 = vmax.f32 %v1346_v14, -1e+30  ;;  %v1157_v16 = vpop.xlane.xlu1 %1156  ;;  %v2453_v14 = vld [vmem:[%s3834_s27] sm:$0xff] }
 0x2c3   : > { %v1158_v20 = vadd.f32 %v1157_v16, %v1154_v18 }
 0x2c4   : > { %v1351_v17 = vsub.f32 %v1341_v55, %v1347_v15  ;;  %v1348_v40 = vsub.f32 -1e+30, %v1347_v15 }
 0x2c5   : > { %1438 = vmatpush.bf16.msra.mxu3 %v2453_v14 }
 0x2c6   : > { %v1352_v19 = vmul.f32 1.442695, %v1351_v17  ;;  %v2630_v21 = vpop.eup %2629  ;;  %v1349_v44 = vmul.f32 1.442695, %v1348_v40 }
 0x2c7   : > { %v1291_v22 = vsel %vm1124_vm1, %v2630_v21, 0.0  ;;  %v1295_v25 = vpack.c.bf16 %v2630_v21, %v2630_v21 }
 0x2c8   : > { %2631 = vpow2.f32 %v1352_v19  ;;  %1292 = vadd.xlane.f32.xlu0 %v1291_v22  ;;  %v2613_v22 = vld [vmem:[#allocation10] ss:$0 sm:$0xff] }
 0x2c9   : > { %v1297_v23 = vpop.permute.xlu2 %1296  ;;  %2633 = vrcp.f32 %v1158_v20 }
 0x2ca   : > { %v1302_v24 = vsel %vm1163_vm2, %v1297_v23, 0  ;;  %2635 = vpow2.f32 %v1218_v35  ;;  %v1026_v23 = vunpack.c.l.bf16 %v3508_v4 }
 0x2cb   : > { %1311 = vmatpush.bf16.msra.mxu0 %v1302_v24  ;;  %2637 = vpow2.f32 %v1285_v37 }
 0x2cd   : > { %v1176_v26 = vpop.f32.mrf.mxu0 }
 0x2ce   : > { %2361 = vmatmul.msk.bf16.vlgmr.msra.gmra.mxu0 %vm1124_vm1, %v1295_v25  ;;  %v2632_v27 = vpop.eup %2631  ;;  %v1180_v28 = vadd.f32 %v1176_v26, %v1154_v18 }
 0x2cf   : > { %v2634_v29 = vpop.eup %2633  ;;  %v1359_v30 = vpack.c.bf16 %v2632_v27, %v2632_v27  ;;  %v1355_v31 = vsel %vm1124_vm1, %v2632_v27, 0.0 }
 0x2d0   : > { %v3556_v32 = vmul.f32 %v2634_v29, %v1180_v28  ;;  %1356 = vadd.xlane.f32.xlu0 %v1355_v31  ;;  %v2636_v39 = vpop.eup %2635  ;;  %v3116_v29 = vmov 32.0   ;;  %v3117_v31 = vmov 0  }
 0x2d1   : > { %2363 = vmatmul.msk.bf16.vlgmr.msra.gmra.mxu2 %vm1124_vm1, %v1359_v30  ;;  %v1223_v41 = vmul.f32 0.0, %v2636_v39  ;;  %v2638_v43 = vpop.eup %2637  ;;  %2611 = vset.pattern.permute.xlu1 %v3117_v31 }
 0x2d2   : > { %v1290_v46 = vmul.f32 0.0, %v2638_v43  ;;  %v1183_v16 = vpack.c.bf16 %v3556_v32, %v3556_v32  ;;  %2612 = vset.pattern.permute.xlu0 %v3117_v31  ;;  %v2457_v43 = vld [vmem:[#allocation16] sm:$0xff] }
 0x2d5   : > { %v1178_v33 = vpop.f32.mrf.mxu0 }
 0x333   : > { %v1226_v38 = vpop.xlane.xlu0 %1225 }
 0x334   : > { %v1227_v42 = vadd.f32 %v1226_v38, %v1223_v41 }
 0x336   : > { %2639 = vrcp.f32 %v1227_v42  ;;  %v2458_v42 = vld [vmem:[#allocation16 + $0x8] sm:$0xff] }
 0x337   : > { %2641 = vpow2.f32 %v1349_v44  ;;  %1550 = vmatpush.bf16.msrb.mxu1 %v2458_v42  ;;  %v2456_v44 = vld [vmem:[#allocation14 + $0x8] sm:$0xff] }
 0x338   : > { %1516 = vmatpush.bf16.msrb.mxu0 %v2456_v44 }
 0x33b   : > { %v1293_v45 = vpop.xlane.xlu0 %1292  ;;  %1551 = vmatpush.bf16.msrb.mxu1 %v2457_v43 }
 0x33c   : > { %v1294_v47 = vadd.f32 %v1293_v45, %v1290_v46  ;;  %v2640_v50 = vpop.eup %2639  ;;  %v1024_v45 = vld [vmem:[%s876_s20] sm:$0xf]  ;;  %s3837_s20 = sld [smem:[#allocation49_spill]] }
 0x33d   : > { %v2642_v51 = vpop.eup %2641 }
 0x33e   : > { %2643 = vrcp.f32 %v1294_v47  ;;  %v1354_v55 = vmul.f32 0.0, %v2642_v51  ;;  %2390 = vmatmul.msk.bf16.vlgmr.msrb.gmra.mxu1 %vm1043_vm0, %v1024_v45 }
 0x343   : > { %v1357_v53 = vpop.xlane.xlu0 %1356 }
 0x344   : > { %v1249_v48 = vpop.f32.mrf.mxu2  ;;  %v2644_v59 = vpop.eup %2643  ;;  %v1358_v60 = vadd.f32 %v1357_v53, %v1354_v55 }
 0x345   : > { %v1253_v49 = vadd.f32 %v1249_v48, %v1223_v41 }
 0x346   : > { %2645 = vrcp.f32 %v1358_v60 }
 0x347   : > { %v1255_v52 = vmul.f32 %v2640_v50, %v1253_v49  ;;  %2647 = vrcp.f32 %v3116_v29 }
 0x349   : > { %v1256_v54 = vpack.c.bf16 %v1255_v52, %v1255_v52 }
 0x34b   : > { %v1313_v56 = vpop.f32.mrf.mxu0  ;;  %v1386_v57 = vunpack.c.l.b16 %v1256_v54 }
 0x34c   : > { %v1317_v58 = vadd.f32 %v1313_v56, %v1290_v46  ;;  %v1251_v61 = vpop.f32.mrf.mxu2  ;;  %v2646_v7 = vpop.eup %2645  ;;  %v2455_v46 = vld [vmem:[#allocation14] sm:$0xff]  ;;  %v2614_v56 = vld [vmem:[#allocation11] ss:$0 sm:$0xff] }
 0x34d   : > { %v1387_v63 = vpack.c.b16 %v1386_v57, %v1386_v57  ;;  %v2648_v4 = vpop.eup %2647  ;;  %1517 = vmatpush.bf16.msrb.mxu0 %v2455_v46 }
 0x34e   : > { %v1319_v62 = vmul.f32 %v2644_v59, %v1317_v58  ;;  %v1451_v32 = vmul.f32 32.0, %v2648_v4  ;;  %vm1455_vm5 = vweird.f32 %v2648_v4  ;;  %v2615_v58 = vld [vmem:[#allocation13] ss:$0 sm:$0xff] }
 0x34f   : > { %1388 = vrot.lane.b32.xlu2 %v1387_v63, %s3113_s1 }
 0x350   : > { %v1320_v0 = vpack.c.bf16 %v1319_v62, %v1319_v62  ;;  %v1452_v33 = vsub.f32 1.0, %v1451_v32 }
 0x352   : > { %v1391_v1 = vunpack.c.l.b16 %v1320_v0  ;;  %v1453_v34 = vmul.f32 %v2648_v4, %v1452_v33 }
 0x353   : > { %v1315_v2 = vpop.f32.mrf.mxu0 }
 0x354   : > { %v1392_v3 = vpack.c.b16 %v1391_v1, %v1391_v1  ;;  %v1377_v5 = vpop.f32.mrf.mxu2  ;;  %v1454_v35 = vadd.f32 %v2648_v4, %v1453_v34 }
 0x355   : > { %v1381_v6 = vadd.f32 %v1377_v5, %v1354_v55 }
 0x356   : > { %1393 = vrot.lane.b32.xlu0 %v1392_v3, %s3114_s0  ;;  %v3581_v36 = vsel %vm1455_vm5, %v2648_v4, %v1454_v35 }
 0x357   : > { %v1383_v8 = vmul.f32 %v2646_v7, %v1381_v6 }
 0x359   : > { %v1384_v9 = vpack.c.bf16 %v1383_v8, %v1383_v8  ;;  %v2460_v8 = vld [vmem:[#allocation17 + $0x8] sm:$0xff] }
 0x35a   : > { %1580 = vmatpush.bf16.msrb.mxu2 %v2460_v8 }
 0x35b   : > { %v1396_v10 = vunpack.c.l.b16 %v1384_v9  ;;  %v2459_v9 = vld [vmem:[#allocation17] sm:$0xff] }
 0x35c   : > { %v1379_v11 = vpop.f32.mrf.mxu2 }
 0x35d   : > { %v1397_v12 = vpack.c.b16 %v1396_v10, %v1396_v10 }
 0x35e   : > { %1581 = vmatpush.bf16.msrb.mxu2 %v2459_v9 }
 0x35f   : > { %1398 = vrot.lane.b32.xlu2 %v1397_v12, %s3775_s26  ;;  %s1021_s26 = scalar_lea.vmem %s3835_s5, %s2328_s28  ;;  %s2444_s5 = sshll.u32 %s3272_s8, 3 }
 0x360   : > { %v1025_v30 = vld [vmem:[%s1021_s26] sm:$0xff]  ;;  %s3838_s26 = sld [smem:[#allocation50_spill]] }
 0x361   : > { %1486 = vperm.xlu1 %2611, %v1025_v30   ;;  %2399 = vmatmul.msk.bf16.vlgmr.msrb.gmra.mxu2 %vm1043_vm0, %v1024_v45 }
 0x3a9   : > { %v1389_v15 = vpop.permute.xlu2 %1388 }
 0x3aa   : > { %v1402_v17 = vsel %vm1124_vm1, %v1183_v16, %v1389_v15 }
 0x3b9   : > { %v1399_v19 = vpop.permute.xlu2 %1398 }
 0x3bb   : > { %v1553_v1 = vpop.f32.mrf.mxu1 }
 0x3bc   : > { %v1557_v2 = vpack.c.bf16 %v1553_v1, %v1553_v1 }
 0x3be   : > { %v1594_v3 = vsel %vm1124_vm1, %v1557_v2, 0  ;;  %v1654_v5 = vunpack.c.l.b16 %v1557_v2 }
 0x3bf   : > { %1603 = vmatpush.bf16.xpose.msrb.mxu3 %v1594_v3 }
 0x3c0   : > { %v1655_v6 = vpack.c.b16 %v1654_v5, %v1654_v5 }
 0x3c3   : > { %v1555_v7 = vpop.f32.mrf.mxu1 }
 0x3c8   : > { %v1394_v18 = vpop.permute.xlu0 %1393 }
 0x3c9   : > { %v1405_v20 = vsel %vm1403_vm3, %v1402_v17, %v1394_v18 }
 0x3ca   : > { %v1408_v21 = vsel %vm1406_vm4, %v1405_v20, %v1399_v19 }
 0x3cb   : > { %2372 = vmatmul.msk.bf16.vlgmr.msra.gmra.mxu3 %vm1043_vm0, %v1408_v21  ;;  %v1588_v21 = vld [vmem:[%s896_s10] sm:$0xf]  ;;  %s3840_s10 = sld [smem:[#allocation52_spill]] }
 0x3d3   : > { %v3589_v61 = vpop.permute.xlu1 %1486 }
 0x44e   : > { %v1440_v24 = vpop.f32.mrf.mxu3 }
 0x44f   : > { %v1441_v25 = vadd.f32 %v2613_v22, %v1440_v24  ;;  %v1589_v24 = vunpack.c.l.bf16 %v1588_v21 }
 0x451   : > { %v1444_v26 = vadd.f32 %v1441_v25, %v1026_v23  ;;  %v1583_v25 = vpop.f32.mrf.mxu2 }
 0x453   : > { %v1447_v27 = vsel %vm1043_vm0, %v1444_v26, 0.0 }
 0x454   : > { %1448 = vadd.xlane.f32.xlu2 %v1447_v27 }
 0x456   : > { %v1442_v28 = vpop.f32.mrf.mxu3 }
 0x459   : > { %v1585_v34 = vpop.f32.mrf.mxu2 }
 0x46c   : > { %1656 = vrot.lane.b32.xlu2 %v1655_v6, %s3111_s13 }
 0x4c7   : > { %v1449_v37 = vpop.xlane.xlu2 %1448 }
 0x4c8   : > { %v1457_v38 = vmul.f32 %v3581_v36, %v1449_v37 }
 0x4ca   : > { %v1458_v39 = vsub.f32 %v1444_v26, %v1457_v38  ;;  %v1587_v26 = vpack.c.bf16 %v1583_v25, %v1583_v25 }
 0x4cc   : > { %v1459_v40 = vmul.f32 %v1458_v39, %v1458_v39  ;;  %v1629_v28 = vsel %vm1163_vm2, %v1587_v26, 0  ;;  %v1694_v29 = vunpack.c.l.b16 %v1587_v26 }
 0x4cd   : > { %1638 = vmatpush.bf16.msra.mxu0 %v1629_v28 }
 0x4ce   : > { %v1460_v41 = vsel %vm1043_vm0, %v1459_v40, 0.0  ;;  %v1695_v31 = vpack.c.b16 %v1694_v29, %v1694_v29 }
 0x4cf   : > { %1461 = vadd.xlane.f32.xlu0 %v1460_v41  ;;  %v1657_v16 = vpop.permute.xlu2 %1656 }
 0x4d0   : > { %v1662_v17 = vsel %vm1124_vm1, %v1657_v16, 0 }
 0x4d1   : > { %1671 = vmatpush.bf16.xpose.msra.mxu1 %v1662_v17 }
 0x4e3   : > { %1723 = vrot.lane.b32.xlu0 %v1655_v6, %s3110_s29 }
 0x542   : > { %v1462_v47 = vpop.xlane.xlu0 %1461 }
 0x543   : > { %v1463_v48 = vmul.f32 %v1462_v47, %v3581_v36 }
 0x545   : > { %v1464_v49 = vadd.f32 1e-05, %v1463_v48 }
 0x547   : > { %2649 = vrsqrt.f32 %v1464_v49  ;;  %vm1471_vm7 = vweird.f32 %v1464_v49 }
 0x54d   : > { %v2650_v50 = vpop.eup %2649 }
 0x54e   : > { %v1466_v51 = vmul.f32 %v2650_v50, %v1464_v49  ;;  %vm1472_vm6 = vweird.f32 %v2650_v50 }
 0x54f   : > { %vm1473_vm8 = vmor %vm1471_vm7, %vm1472_vm6 }
 0x550   : > { %v1467_v52 = vmul.f32 %v2650_v50, %v1466_v51 }
 0x552   : > { %v1468_v53 = vmul.f32 0.5, %v1467_v52 }
 0x554   : > { %v1469_v54 = vsub.f32 1.5, %v1468_v53 }
 0x555   : > { %v1724_v18 = vpop.permute.xlu0 %1723 }
 0x556   : > { %v1470_v55 = vmul.f32 %v2650_v50, %v1469_v54  ;;  %v1729_v19 = vsel %vm1124_vm1, %v1724_v18, 0 }
 0x557   : > { %1738 = vmatpush.bf16.xpose.msra.mxu3 %v1729_v19 }
 0x558   : > { %v1474_v57 = vsel %vm1473_vm8, %v2650_v50, %v1470_v55 }
 0x559   : > { %v1475_v59 = vmul.f32 %v1474_v57, %v1458_v39 }
 0x55b   : > { %v1479_v60 = vmul.f32 %v2614_v56, %v1475_v59 }
 0x55d   : > { %v1483_v62 = vadd.f32 %v2615_v58, %v1479_v60 }
 0x55f   : > { %v3592_v63 = vmul.f32 %v3589_v61, %v1483_v62 }
 0x561   : > { %v1490_v0 = vpack.c.bf16 %v3592_v63, %v3592_v63 }
 0x563   : > { %2381 = vmatmul.msk.bf16.vlgmr.msrb.gmra.mxu0 %vm1043_vm0, %v1490_v0 }
 0x5e0   : > { %v1519_v10 = vpop.f32.mrf.mxu0 }
 0x5e1   : > { %v1523_v11 = vmul.f32 0.35355338, %v1519_v10 }
 0x5e3   : > { %v1524_v12 = vpack.c.bf16 %v1523_v11, %v1523_v11 }
 0x5e5   : > { %v1649_v13 = vunpack.c.l.b16 %v1524_v12  ;;  %2400 = vmatmul.msk.bf16.vlgmr.msrb.gmra.mxu3 %vm1124_vm1, %v1524_v12 }
 0x5e7   : > { %v1650_v14 = vpack.c.b16 %v1649_v13, %v1649_v13 }
 0x5e8   : > { %v1521_v15 = vpop.f32.mrf.mxu0 }
 0x5e9   : > { %1785 = vrot.lane.b32.xlu2 %v1650_v14, %s3112_s3  ;;  %1651 = vrot.lane.b32.xlu1 %v1650_v14, %s3111_s13 }
 0x5f1   : > { %1787 = vrot.lane.b32.xlu1 %v1655_v6, %s3112_s3  ;;  %1696 = vrot.lane.b32.xlu2 %v1695_v31, %s3111_s13 }
 0x5f9   : > { %1721 = vrot.lane.b32.xlu1 %v1650_v14, %s3110_s29 }
 0x643   : > { %v1786_v33 = vpop.permute.xlu2 %1785 }
 0x64b   : > { %v1697_v55 = vpop.permute.xlu2 %1696 }
 0x64c   : > { %v1702_v56 = vsel %vm1163_vm2, %v1697_v55, 0 }
 0x64d   : > { %1711 = vmatpush.bf16.msra.mxu2 %v1702_v56 }
 0x65b   : > { %v1652_v20 = vpop.permute.xlu1 %1651 }
 0x65c   : > { %2402 = vmatmul.msk.bf16.vlgmr.msra.gmra.mxu1 %vm1124_vm1, %v1652_v20 }
 0x663   : > { %v1788_v22 = vpop.permute.xlu1 %1787 }
 0x664   : > { %v1793_v23 = vsel %vm1124_vm1, %v1788_v22, 0 }
 0x665   : > { %1802 = vmatpush.bf16.xpose.msrb.mxu1 %v1793_v23 }
 0x668   : > { %v1605_v27 = vpop.f32.mrf.mxu3 }
 0x669   : > { %v1606_v30 = vadd.f32 %v1605_v27, %v1589_v24 }
 0x66b   : > { %v1722_v4 = vpop.permute.xlu1 %1721  ;;  %v1609_v32 = vsel %vm1124_vm1, %v1606_v30, -inf }
 0x66c   : > { %1610 = vmax.xlane.f32.xlu1 %v1609_v32  ;;  %2404 = vmatmul.msk.bf16.vlgmr.msra.gmra.mxu3 %vm1124_vm1, %v1722_v4 }
 0x66d   : > { %2406 = vmatmul.msk.bf16.vlgmr.msrb.gmra.mxu1 %vm1124_vm1, %v1786_v33 }
 0x670   : > { %v1607_v35 = vpop.f32.mrf.mxu3 }
 0x685   : > { %1824 = vrot.lane.b32.xlu1 %v1695_v31, %s3112_s3  ;;  %s3841_s3 = sld [smem:[#allocation53_spill]] }
 0x6d9   : > { %v1673_v37 = vpop.f32.mrf.mxu1 }
 0x6da   : > { %v1674_v38 = vadd.f32 %v1673_v37, %v1589_v24 }
 0x6dc   : > { %v1677_v39 = vsel %vm1124_vm1, %v1674_v38, -inf }
 0x6dd   : > { %1678 = vmax.xlane.f32.xlu0 %v1677_v39 }
 0x6df   : > { %v1611_v40 = vpop.xlane.xlu1 %1610 }
 0x6e0   : > { %v1612_v41 = vmax.f32 %v1611_v40, -1e+30 }
 0x6e1   : > { %v1675_v42 = vpop.f32.mrf.mxu1 }
 0x6e2   : > { %v1616_v43 = vsub.f32 %v1606_v30, %v1612_v41  ;;  %v1613_v2 = vsub.f32 -1e+30, %v1612_v41 }
 0x6e4   : > { %v1617_v44 = vmul.f32 1.442695, %v1616_v43  ;;  %v1614_v5 = vmul.f32 1.442695, %v1613_v2 }
 0x6e6   : > { %2651 = vpow2.f32 %v1617_v44 }
 0x6ea   : > { %v1804_v45 = vpop.f32.mrf.mxu1 }
 0x6eb   : > { %v1805_v46 = vadd.f32 %v1804_v45, %v1589_v24 }
 0x6ec   : > { %v2652_v47 = vpop.eup %2651 }
 0x6ed   : > { %v1808_v48 = vsel %vm1124_vm1, %v1805_v46, -inf  ;;  %v1624_v49 = vpack.c.bf16 %v2652_v47, %v2652_v47  ;;  %v1620_v59 = vsel %vm1124_vm1, %v2652_v47, 0.0 }
 0x6ee   : > { %1809 = vmax.xlane.f32.xlu2 %v1808_v48 }
 0x6ef   : > { %v1740_v50 = vpop.f32.mrf.mxu3  ;;  %2401 = vmatmul.msk.bf16.vlgmr.msra.gmra.mxu0 %vm1124_vm1, %v1624_v49 }
 0x6f0   : > { %v1741_v51 = vadd.f32 %v1740_v50, %v1589_v24 }
 0x6f2   : > { %v1806_v52 = vpop.f32.mrf.mxu1  ;;  %v1744_v53 = vsel %vm1124_vm1, %v1741_v51, -inf }
 0x6f3   : > { %1745 = vmax.xlane.f32.xlu0 %v1744_v53 }
 0x6f7   : > { %v1742_v54 = vpop.f32.mrf.mxu3  ;;  %v1825_v57 = vpop.permute.xlu1 %1824 }
 0x6f8   : > { %v1830_v58 = vsel %vm1163_vm2, %v1825_v57, 0 }
 0x6f9   : > { %1839 = vmatpush.bf16.msrb.mxu2 %v1830_v58 }
 0x707   : > { %1760 = vrot.lane.b32.xlu0 %v1695_v31, %s3110_s29 }
 0x731   : > { %1621 = vadd.xlane.f32.xlu0 %v1620_v59 }
 0x750   : > { %v1679_v60 = vpop.xlane.xlu0 %1678 }
 0x751   : > { %v1680_v62 = vmax.f32 %v1679_v60, -1e+30 }
 0x753   : > { %v1684_v0 = vsub.f32 %v1674_v38, %v1680_v62  ;;  %v1681_v32 = vsub.f32 -1e+30, %v1680_v62 }
 0x755   : > { %v1685_v1 = vmul.f32 1.442695, %v1684_v0  ;;  %v1682_v33 = vmul.f32 1.442695, %v1681_v32 }
 0x757   : > { %2653 = vpow2.f32 %v1685_v1 }
 0x758   : > { %2655 = vpow2.f32 %v1614_v5 }
 0x75d   : > { %v2654_v3 = vpop.eup %2653 }
 0x75e   : > { %v1692_v6 = vpack.c.bf16 %v2654_v3, %v2654_v3  ;;  %v1688_v7 = vsel %vm1124_vm1, %v2654_v3, 0.0  ;;  %v2656_v14 = vpop.eup %2655 }
 0x75f   : > { %1689 = vadd.xlane.f32.xlu2 %v1688_v7  ;;  %v1619_v17 = vmul.f32 0.0, %v2656_v14  ;;  %v2462_v14 = vld [vmem:[%s3741_s15 + $0x8] sm:$0xff] }
 0x760   : > { %2403 = vmatmul.msk.bf16.vlgmr.msra.gmra.mxu2 %vm1124_vm1, %v1692_v6  ;;  %1899 = vmatpush.bf16.msrb.mxu3 %v2462_v14 }
 0x761   : > { %v1810_v8 = vpop.xlane.xlu2 %1809 }
 0x762   : > { %v1811_v9 = vmax.f32 %v1810_v8, -1e+30 }
 0x764   : > { %v1815_v10 = vsub.f32 %v1805_v46, %v1811_v9  ;;  %v1812_v40 = vsub.f32 -1e+30, %v1811_v9 }
 0x766   : > { %v1816_v11 = vmul.f32 1.442695, %v1815_v10  ;;  %v1746_v12 = vpop.xlane.xlu0 %1745  ;;  %v1813_v45 = vmul.f32 1.442695, %v1812_v40 }
 0x767   : > { %v1747_v13 = vmax.f32 %v1746_v12, -1e+30 }
 0x768   : > { %2657 = vpow2.f32 %v1816_v11 }
 0x769   : > { %v1751_v15 = vsub.f32 %v1741_v51, %v1747_v13  ;;  %v1748_v39 = vsub.f32 -1e+30, %v1747_v13 }
 0x76b   : > { %v1752_v16 = vmul.f32 1.442695, %v1751_v15  ;;  %v1749_v41 = vmul.f32 1.442695, %v1748_v39  ;;  %v2461_v15 = vld [vmem:[%s3741_s15] sm:$0xff]  ;;  %v2467_v39 = vld [vmem:[%s3747_s21 + $0x10] sm:$0xff] }
 0x76c   : > { %v1640_v18 = vpop.f32.mrf.mxu0  ;;  %1900 = vmatpush.bf16.msrb.mxu3 %v2461_v15 }
 0x76d   : > { %2659 = vpow2.f32 %v1752_v16  ;;  %v1644_v19 = vadd.f32 %v1640_v18, %v1619_v17 }
 0x76e   : > { %v2658_v20 = vpop.eup %2657 }
 0x76f   : > { %v1823_v21 = vpack.c.bf16 %v2658_v20, %v2658_v20  ;;  %v1819_v22 = vsel %vm1124_vm1, %v2658_v20, 0.0 }
 0x770   : > { %1820 = vadd.xlane.f32.xlu1 %v1819_v22 }
 0x771   : > { %2407 = vmatmul.msk.bf16.vlgmr.msrb.gmra.mxu2 %vm1124_vm1, %v1823_v21 }
 0x773   : > { %v2660_v23 = vpop.eup %2659 }
 0x774   : > { %v1642_v24 = vpop.f32.mrf.mxu0  ;;  %v1755_v25 = vsel %vm1124_vm1, %v2660_v23, 0.0  ;;  %v1759_v28 = vpack.c.bf16 %v2660_v23, %v2660_v23  ;;  %v2616_v23 = vld [vmem:[%s3742_s16] ss:$0 sm:$0xff] }
 0x775   : > { %1756 = vadd.xlane.f32.xlu2 %v1755_v25 }
 0x779   : > { %v1761_v26 = vpop.permute.xlu0 %1760 }
 0x77a   : > { %v1766_v27 = vsel %vm1163_vm2, %v1761_v26, 0 }
 0x77b   : > { %1775 = vmatpush.bf16.msrb.mxu0 %v1766_v27 }
 0x77e   : > { %2405 = vmatmul.msk.bf16.vlgmr.msrb.gmra.mxu0 %vm1124_vm1, %v1759_v28 }
 0x7a4   : > { %v1622_v29 = vpop.xlane.xlu0 %1621 }
 0x7a5   : > { %v1623_v30 = vadd.f32 %v1622_v29, %v1619_v17 }
 0x7a7   : > { %2661 = vrcp.f32 %v1623_v30 }
 0x7a8   : > { %2663 = vpow2.f32 %v1682_v33  ;;  %v2464_v33 = vld [vmem:[#allocation19 + $0x8] sm:$0xff] }
 0x7a9   : > { %1970 = vmatpush.bf16.msra.mxu0 %v2464_v33 }
 0x7ad   : > { %v2662_v31 = vpop.eup %2661 }
 0x7ae   : > { %v1646_v4 = vmul.f32 %v2662_v31, %v1644_v19  ;;  %v2664_v34 = vpop.eup %2663 }
 0x7af   : > { %v1687_v37 = vmul.f32 0.0, %v2664_v34  ;;  %v2463_v34 = vld [vmem:[#allocation19] sm:$0xff] }
 0x7b0   : > { %v1647_v18 = vpack.c.bf16 %v1646_v4, %v1646_v4  ;;  %1971 = vmatpush.bf16.msra.mxu0 %v2463_v34 }
 0x7d2   : > { %v1690_v35 = vpop.xlane.xlu2 %1689 }
 0x7d3   : > { %v1691_v38 = vadd.f32 %v1690_v35, %v1687_v37 }
 0x7d5   : > { %2665 = vrcp.f32 %v1691_v38 }
 0x7d6   : > { %2667 = vpow2.f32 %v1749_v41 }
 0x7d7   : > { %2669 = vpow2.f32 %v1813_v45 }
 0x7db   : > { %v2666_v44 = vpop.eup %2665 }
 0x7dc   : > { %v2668_v51 = vpop.eup %2667 }
 0x7dd   : > { %v2670_v52 = vpop.eup %2669  ;;  %v1754_v54 = vmul.f32 0.0, %v2668_v51 }
 0x7de   : > { %v1818_v56 = vmul.f32 0.0, %v2670_v52 }
 0x7e3   : > { %v1713_v42 = vpop.f32.mrf.mxu2  ;;  %v1821_v55 = vpop.xlane.xlu1 %1820 }
 0x7e4   : > { %v1717_v43 = vadd.f32 %v1713_v42, %v1687_v37  ;;  %v1822_v58 = vadd.f32 %v1821_v55, %v1818_v56  ;;  %v2465_v55 = vld [vmem:[%s3747_s21] sm:$0xff] }
 0x7e6   : > { %v1719_v46 = vmul.f32 %v2666_v44, %v1717_v43 }
 0x7e8   : > { %v1720_v47 = vpack.c.bf16 %v1719_v46, %v1719_v46  ;;  %v1757_v53 = vpop.xlane.xlu2 %1756  ;;  %v2617_v46 = vld [vmem:[%s3743_s17] ss:$0 sm:$0xff] }
 0x7e9   : > { %v1758_v57 = vadd.f32 %v1757_v53, %v1754_v54 }
 0x7ea   : > { %v1850_v48 = vunpack.c.l.b16 %v1720_v47 }
 0x7eb   : > { %v1715_v49 = vpop.f32.mrf.mxu2  ;;  %2671 = vrcp.f32 %v1758_v57 }
 0x7ec   : > { %v1851_v50 = vpack.c.b16 %v1850_v48, %v1850_v48  ;;  %2673 = vrcp.f32 %v1822_v58  ;;  %v2618_v48 = vld [vmem:[%s3837_s20] ss:$0 sm:$0xff] }
 0x7ee   : > { %1852 = vrot.lane.b32.xlu2 %v1851_v50, %s3113_s1 }
 0x7f1   : > { %v2672_v1 = vpop.eup %2671 }
 0x7f2   : > { %v2674_v5 = vpop.eup %2673 }
 0x7f4   : > { %v1841_v59 = vpop.f32.mrf.mxu2 }
 0x7f5   : > { %v1845_v62 = vadd.f32 %v1841_v59, %v1818_v56  ;;  %v2619_v56 = vld [vmem:[%s3838_s26] ss:$0 sm:$0xff]  ;;  %s3842_s26 = sld [smem:[#allocation54_spill]] }
 0x7f7   : > { %v1847_v6 = vmul.f32 %v2674_v5, %v1845_v62 }
 0x7f9   : > { %v1848_v10 = vpack.c.bf16 %v1847_v6, %v1847_v6 }
 0x7fb   : > { %v1777_v60 = vpop.f32.mrf.mxu0  ;;  %v1860_v12 = vunpack.c.l.b16 %v1848_v10  ;;  %s2078_s28 = scalar_lea.hbm %s3842_s26, %s2444_s5 }
 0x7fc   : > { %v1781_v0 = vadd.f32 %v1777_v60, %v1754_v54  ;;  %v1843_v2 = vpop.f32.mrf.mxu2  ;;  %v2466_v54 = vld [vmem:[%s3747_s21 + $0x8] sm:$0xff]  ;;  %s2082_s7 = sshll.u32 %s2078_s28, 4  ;;  %s2083_s7 = int_to_ptr.hbm [resolvable:$true] %s2082_s7 }
 0x7fd   : > { %v1861_v13 = vpack.c.b16 %v1860_v12, %v1860_v12  ;;  %s3023_s20 = sshra.s32 %s2083_s7, 4  ;;  %s3024_s20 = int_to_ptr.hbm [resolvable:$true] %s3023_s20 }
 0x7fe   : > { %v1783_v3 = vmul.f32 %v2672_v1, %v1781_v0  ;;  %v2620_v0 = vld [vmem:[%s3839_s14] ss:$0 sm:$0xff]  ;;  %s1017_s14 = scalar_lea.vmem [#allocation20], %s2327_s24  ;;  %s3029_s24 = scalar_lea.hbm %s3842_s26, 16 }
 0x7ff   : > { %s2080_s8 = sshll.u32 %s1017_s14, 4  ;;  %p3030_p3 = scmp.lt.s32.totalorder %s3024_s20, %s3842_s26  ;;  %s2081_s8 = int_to_ptr.vmem [resolvable:$true] %s2080_s8 }
 0x800   : > { %v1784_v7 = vpack.c.bf16 %v1783_v3, %v1783_v3 }
 0x802   : > { %v1855_v8 = vunpack.c.l.b16 %v1784_v7 }
 0x803   : > { %v1779_v9 = vpop.f32.mrf.mxu0 }
 0x804   : > { %v1856_v11 = vpack.c.b16 %v1855_v8, %v1855_v8 }
 0x806   : > { %1857 = vrot.lane.b32.xlu2 %v1856_v11, %s3114_s0 }
 0x80e   : > { %1862 = vrot.lane.b32.xlu2 %v1861_v13, %s3836_s23  ;;  %s2068_s23 = scalar_lea.sflag [#allocation4], %s3457_s4 }
 0x848   : > { %v1853_v16 = vpop.permute.xlu2 %1852 }
 0x849   : > { %v1866_v19 = vsel %vm1124_vm1, %v1647_v18, %v1853_v16 }
 0x860   : > { %v1858_v17 = vpop.permute.xlu2 %1857 }
 0x861   : > { %v1868_v20 = vsel %vm1403_vm3, %v1866_v19, %v1858_v17 }
 0x868   : > { %v1863_v21 = vpop.permute.xlu2 %1862 }
 0x869   : > { %v1870_v22 = vsel %vm1406_vm4, %v1868_v20, %v1863_v21  ;;  %v2621_v21 = vld [vmem:[%s3840_s10] ss:$0 sm:$0xff]  ;;  %s3025_s10 = scalar_lea.hbm %s3024_s20, 8 }
 0x86a   : > { %2416 = vmatmul.msk.bf16.vlgmr.msrb.gmra.mxu3 %vm1043_vm0, %v1870_v22  ;;  %p3026_p10 = scmp.ne.s32.totalorder %s3024_s20, %s3025_s10  ;;  %p3031_p7 = scmp.lt.s32.totalorder %s3029_s24, %s3025_s10 }
 0x86c   : > { %p3027_p6 = pnand %p3026_p10, %p3337_p5  ;;  %p3032_p9 = por %p3031_p7, %p3030_p3 }
 0x86e   : > { %p3028_p11 = pneg %p3027_p6 }
 0x870   : > { %p3033_p13 = pnand %p3032_p9, %p3028_p11 }
 0x8ed   : > { %v1902_v24 = vpop.f32.mrf.mxu3 }
 0x8ee   : > { %v1903_v25 = vadd.f32 %v2616_v23, %v1902_v24 }
 0x8f0   : > { %v1906_v26 = vadd.f32 %v1903_v25, %v3592_v63  ;;  %v2468_v63 = vld [vmem:[%s3747_s21 + $0x18] sm:$0xff] }
 0x8f1   : > { %2023 = vmatpush.bf16.msra.mxu1 %v2468_v63 }
 0x8f2   : > { %v1909_v27 = vsel %vm1043_vm0, %v1906_v26, 0.0 }
 0x8f3   : > { %1910 = vadd.xlane.f32.xlu1 %v1909_v27 }
 0x8f5   : > { %v1904_v28 = vpop.f32.mrf.mxu3  ;;  %2024 = vmatpush.bf16.msra.mxu1 %v2467_v39 }
 0x8f9   : > { %2025 = vmatpush.bf16.msra.mxu1 %v2466_v54 }
 0x8fd   : > { %2026 = vmatpush.bf16.msra.mxu1 %v2465_v55 }
 0x966   : > { %v1911_v29 = vpop.xlane.xlu1 %1910 }
 0x967   : > { %v1912_v30 = vmul.f32 %v1911_v29, %v3581_v36 }
 0x969   : > { %v1913_v31 = vsub.f32 %v1906_v26, %v1912_v30 }
 0x96b   : > { %v1914_v4 = vmul.f32 %v1913_v31, %v1913_v31 }
 0x96d   : > { %v1915_v32 = vsel %vm1043_vm0, %v1914_v4, 0.0 }
 0x96e   : > { %1916 = vadd.xlane.f32.xlu2 %v1915_v32 }
 0x9e1   : > { %v1917_v35 = vpop.xlane.xlu2 %1916 }
 0x9e2   : > { %v1918_v37 = vmul.f32 %v1917_v35, %v3581_v36 }
 0x9e4   : > { %v1919_v38 = vadd.f32 1e-05, %v1918_v37 }
 0x9e6   : > { %2675 = vrsqrt.f32 %v1919_v38  ;;  %vm1926_vm10 = vweird.f32 %v1919_v38 }
 0x9ec   : > { %v2676_v40 = vpop.eup %2675 }
 0x9ed   : > { %v1921_v41 = vmul.f32 %v2676_v40, %v1919_v38  ;;  %vm1927_vm9 = vweird.f32 %v2676_v40 }
 0x9ee   : > { %vm1928_vm11 = vmor %vm1926_vm10, %vm1927_vm9 }
 0x9ef   : > { %v1922_v42 = vmul.f32 %v2676_v40, %v1921_v41 }
 0x9f1   : > { %v1923_v43 = vmul.f32 0.5, %v1922_v42 }
 0x9f3   : > { %v1924_v44 = vsub.f32 1.5, %v1923_v43 }
 0x9f5   : > { %v1925_v45 = vmul.f32 %v2676_v40, %v1924_v44 }
 0x9f7   : > { %v1929_v47 = vsel %vm1928_vm11, %v2676_v40, %v1925_v45 }
 0x9f8   : > { %v1930_v49 = vmul.f32 %v1929_v47, %v1913_v31 }
 0x9fa   : > { %v1934_v50 = vmul.f32 %v2617_v46, %v1930_v49 }
 0x9fc   : > { %v1938_v51 = vadd.f32 %v2618_v48, %v1934_v50 }
 0x9fe   : > { %v1939_v52 = vmul.f32 %v1938_v51, %v3589_v61 }
 0xa00   : > { %v1940_v53 = vpack.c.bf16 %v1939_v52, %v1939_v52 }
 0xa02   : > { %2425 = vmatmul.msk.bf16.vlgmr.msra.gmra.mxu0 %vm1043_vm0, %v1940_v53 }
 0xa7f   : > { %v1973_v57 = vpop.f32.mrf.mxu0 }
 0xa80   : > { %v1974_v58 = vadd.f32 %v2619_v56, %v1973_v57 }
 0xa82   : > { %v1977_v59 = vmax.f32 %v1974_v58, 0.0 }
 0xa84   : > { %v1978_v60 = vpack.c.bf16 %v1977_v59, %v1977_v59 }
 0xa86   : > { %2442 = vmatmul.msk.bf16.vlgmr.msra.gmra.mxu1 %vm2015_vm12, %v1978_v60 }
 0xa87   : > { %v1975_v62 = vpop.f32.mrf.mxu0 }
 0xb03   : > { %v2028_v1 = vpop.f32.mrf.mxu1 }
 0xb04   : > { %v2029_v2 = vadd.f32 %v2620_v0, %v2028_v1 }
 0xb06   : > { %v2032_v3 = vadd.f32 %v2029_v2, %v1939_v52 }
 0xb08   : > { %v2035_v5 = vsel %vm1043_vm0, %v2032_v3, 0.0 }
 0xb09   : > { %2036 = vadd.xlane.f32.xlu0 %v2035_v5 }
 0xb0b   : > { %v2030_v6 = vpop.f32.mrf.mxu1 }
 0xb7c   : > { %v2037_v7 = vpop.xlane.xlu0 %2036 }
 0xb7d   : > { %v2038_v8 = vmul.f32 %v2037_v7, %v3581_v36 }
 0xb7f   : > { %v2039_v9 = vsub.f32 %v2032_v3, %v2038_v8 }
 0xb81   : > { %v2040_v10 = vmul.f32 %v2039_v9, %v2039_v9 }
 0xb83   : > { %v2041_v11 = vsel %vm1043_vm0, %v2040_v10, 0.0 }
 0xb84   : > { %2042 = vadd.xlane.f32.xlu1 %v2041_v11 }
 0xbf7   : > { %v2043_v12 = vpop.xlane.xlu1 %2042 }
 0xbf8   : > { %v2044_v13 = vmul.f32 %v2043_v12, %v3581_v36  ;;  %v2622_v36 = vld [vmem:[%s3841_s3] ss:$0 sm:$0xff] }
 0xbfa   : > { %v2045_v14 = vadd.f32 1e-05, %v2044_v13 }
 0xbfc   : > { %2677 = vrsqrt.f32 %v2045_v14  ;;  %vm2052_vm14 = vweird.f32 %v2045_v14 }
 0xc02   : > { %v2678_v15 = vpop.eup %2677 }
 0xc03   : > { %v2047_v16 = vmul.f32 %v2678_v15, %v2045_v14  ;;  %vm2053_vm13 = vweird.f32 %v2678_v15 }
 0xc04   : > { %vm2054_vm15 = vmor %vm2052_vm14, %vm2053_vm13 }
 0xc05   : > { %v2048_v17 = vmul.f32 %v2678_v15, %v2047_v16 }
 0xc07   : > { %v2049_v18 = vmul.f32 0.5, %v2048_v17 }
 0xc09   : > { %v2050_v19 = vsub.f32 1.5, %v2049_v18 }
 0xc0b   : > { %v2051_v20 = vmul.f32 %v2678_v15, %v2050_v19 }
 0xc0d   : > { %v2055_v22 = vsel %vm2054_vm15, %v2678_v15, %v2051_v20 }
 0xc0e   : > { %v2056_v23 = vmul.f32 %v2055_v22, %v2039_v9 }
 0xc10   : > { %v2060_v24 = vmul.f32 %v2621_v21, %v2056_v23 }
 0xc12   : > { %v2064_v25 = vadd.f32 %v2622_v36, %v2060_v24 }
 0xc14   : > { %v2065_v26 = vmul.f32 %v2064_v25, %v3589_v61 }
 0xc16   : > { %2066 = vst.msk [vmem:[%s1017_s14] sm:$0xff] %vm1043_vm0, %v2065_v26 }
 0xc17   : > { %3036 = shalt.err (!%p3033_p13)
}
 0xc18   : > { %2505 = dma.vmem_to_hbm [thread:$0]  (%p3337_p5), %s2081_s8, 128, %s2083_s7, %s2068_s23  }
 0xc19 PF: > { %s3844_s4 = sld [smem:[#allocation29_spill]]  ;;  %p3846_p0 = scmp.ge.s32.totalorder %s3099_s30, 2 }
 0xc1b   : > { %p2543_p2 = pnand %p3846_p0, %p3341_p4 }
 0xc1d   : > { %p2544_p12 = pneg %p2543_p2 }
 0xc1f   : > { %s2094_s0 = sand.u32 1, %s3844_s4  }
 0xc20   : > { %s2095_s28 = scalar_lea.sflag [#allocation4], %s2094_s0 }
 0xc21   : > { %3082 = dma.done.wait (%p2544_p12), %s2095_s28, 128  }
 0xc22   : > { %3084 = vsyncadd (%p2544_p12), %s2095_s28, 4294967168  ;;  %s3847_s30 = sld [smem:[#allocation30_spill]]  ;;  %s3849_s29 = smov %s3091_s2 }
 0xc23   : > { %s3848_s14 = sld [smem:[#allocation31_spill]]  ;;  %s3850_s2 = smov %s3095_s6 }
 0xc28   : > { %p47_p1 = scmp.ge.s32.totalorder %s3847_s30, 4  }
 0xc29   : > { %s3851_s6 = smov %s3848_s14 }
 0xc2a   :  { %49 = sbr.rel (!%p47_p1) target bundleno = 34 (0x22), region = 233 }
 0xc2f   :  { %2101 = vsyncpa [#allocation3], 1 }
 0xc30   :  { %2103 = vsyncpa [#allocation3 + $0x1], 1 }
 0xc31   :  { %2104 = vsyncpa [#allocation6], 1 }
 0xc32   :  { %2106 = vsyncpa [#allocation6 + $0x1], 1 }
 0xc33   :  { %2107 = vsyncpa [#allocation9], 1 }
 0xc34   :  { %2109 = vsyncpa [#allocation9 + $0x1], 1 }
 0xc35   :  { %2110 = vsyncpa [#allocation12], 1 }
 0xc36   :  { %2111 = vsyncpa [#allocation15], 1 }
 0xc37   :  { %2112 = vsyncpa [#allocation18], 1 }
 0xc38   :  { %2113 = vsyncpa [#allocation4], 1 }
 0xc39   :  { %2115 = vsyncpa [#allocation4 + $0x1], 1 }

</bundles_post_ra>
